<compile_context>
chip_gen: v7x
topology: tpu7x:2x2x1
jax: 0.10.0
libtpu: 0.0.40
codegen_flags: <defaults>
</compile_context>

<pallas_src>
import functools
import math

import numpy as np
import jax
import jax.numpy as jnp
from jax.experimental import pallas as pl
from jax.experimental.pallas import tpu as pltpu


# Set to jnp.bfloat16 on v6e / v7x for ~2x MXU rate and half the DMA bytes
# (accumulation stays float32 inside the kernel).  Default keeps exact f32
# semantics of the PyTorch reference.
COMPUTE_DTYPE = jnp.float32

_K_TILE_MAX = 2048          # contraction-axis tile cap (bounds VMEM on v7x)
_M_TILE_MAX = 2048          # lane-axis tile cap
_VMEM_BUDGET = 24 * 1024 * 1024


# ----------------------------- Pallas kernel --------------------------------

def _conv_mm_kernel(w_ref, x_ref, b_ref, o_ref, acc_ref, *, apply_relu):
    kk = pl.program_id(1)                       # trailing "arbitrary" reduction axis

    @pl.when(kk == 0)
    def _init():
        # Fold the bias into the accumulator init (no separate epilogue add).
        acc_ref[...] = jnp.broadcast_to(b_ref[...], acc_ref.shape).astype(jnp.float32)

    acc_ref[...] += jnp.dot(w_ref[...], x_ref[...],
                            preferred_element_type=jnp.float32)

    @pl.when(kk == pl.num_programs(1) - 1)
    def _finalize():
        res = acc_ref[...]
        if apply_relu:
            res = jnp.maximum(res, 0.0)
        o_ref[...] = res.astype(o_ref.dtype)


def _round_up(x, m):
    return ((x + m - 1) // m) * m


def _vmem_need_bytes(tk, tm, cout):
    # double-buffered input tiles (patches, weights, bias) + double-buffered
    # output tile + f32 accumulator scratch, f32-sized (upper bound).
    return 4 * (2 * (tk * tm + cout * tk + cout) + 2 * cout * tm + cout * tm)


def _choose_m_tile(m_pad, tk, cout):
    """Largest lane tile that fits the VMEM budget, preferring >=2 parallel steps."""
    nb = m_pad // 128
    feasible = []
    for ntiles in range(1, nb + 1):
        if nb % ntiles:
            continue
        tm = m_pad // ntiles
        if tm > _M_TILE_MAX:
            continue
        if _vmem_need_bytes(tk, tm, cout) <= _VMEM_BUDGET:
            feasible.append((ntiles, tm))
    if not feasible:
        return 128
    multi = [f for f in feasible if f[0] >= 2]   # keep both v7x TensorCores busy
    return min(multi or feasible)[1]


def conv_matmul_lane_dense(w_t, patches_t, bias, *, apply_relu, out_dtype):
    """out[Cout, M] = relu?(w_t @ patches_t + bias), with M in the lane dim."""
    cout, k = w_t.shape
    k2, m = patches_t.shape
    assert k == k2

    # K: single full-dim block when it fits, otherwise tiled reduction axis.
    if k <= _K_TILE_MAX:
        k_pad = _round_up(k, 8)
        tk = k_pad
    else:
        tk = _K_TILE_MAX
        k_pad = _round_up(k, tk)
    # M: lane-align; no whole-M fallback block.
    m_pad = _round_up(m, 128)

    if (k_pad, m_pad) != (k, m):
        patches_t = jnp.pad(patches_t, ((0, k_pad - k), (0, m_pad - m)))
    if k_pad != k:
        w_t = jnp.pad(w_t, ((0, 0), (0, k_pad - k)))

    tm = _choose_m_tile(m_pad, tk, cout)
    m_tiles = m_pad // tm
    k_tiles = k_pad // tk

    vmem_limit = int(min(max(4 * _vmem_need_bytes(tk, tm, cout), 32 << 20), 48 << 20))

    out = pl.pallas_call(
        functools.partial(_conv_mm_kernel, apply_relu=apply_relu),
        out_shape=jax.ShapeDtypeStruct((cout, m_pad), out_dtype),
        grid=(m_tiles, k_tiles),
        in_specs=[
            pl.BlockSpec((cout, tk), lambda i, kk: (0, kk)),   # weights
            pl.BlockSpec((tk, tm), lambda i, kk: (kk, i)),     # patches (K, M)
            pl.BlockSpec((cout, 1), lambda i, kk: (0, 0)),     # bias
        ],
        out_specs=pl.BlockSpec((cout, tm), lambda i, kk: (0, i)),
        scratch_shapes=[pltpu.VMEM((cout, tm), jnp.float32)],
        compiler_params=pltpu.CompilerParams(
            dimension_semantics=("parallel", "arbitrary"),
            vmem_limit_bytes=vmem_limit,
        ),
    )(w_t, patches_t, bias.reshape(cout, 1).astype(jnp.float32))
    return out[:, :m]


# --------------------------- SamePadConv3d glue ------------------------------

def same_pad_conv3d_ndhwc(x, w, b, stride, apply_relu):
    """x: (N, D, H, W, Cin) channels-last; w: (Cout, Cin, kd, kh, kw); b: (Cout,)."""
    cout, cin, kd, kh, kw = w.shape
    sd, sh, sw = stride

    # Asymmetric "same" padding: (ceil, floor) split of k - s per spatial dim.
    pads = []
    for k, s in zip((kd, kh, kw), (sd, sh, sw)):
        p = k - s
        pads.append((p // 2 + p % 2, p // 2))
    xp = jnp.pad(x, ((0, 0),) + tuple(pads) + ((0, 0),))

    n, dp, hp, wp, _ = xp.shape
    do = (dp - kd) // sd + 1
    ho = (hp - kh) // sh + 1
    wo = (wp - kw) // sw + 1
    m = n * do * ho * wo
    kk_total = kd * kh * kw

    # im2col in the transposed (K, M) layout so the Pallas output (Cout, M) is
    # lane-dense.  Runs as fused XLA glue under jit (single staging buffer).
    # TODO(synk): fuse this strided-window gather into the kernel grid (manual
    # DMA / Element index maps) to remove the kd*kh*kw-fold HBM staging buffer.
    parts = []
    for dt in range(kd):
        for dh in range(kh):
            for dw in range(kw):
                parts.append(xp[:, dt:dt + do * sd:sd,
                                   dh:dh + ho * sh:sh,
                                   dw:dw + wo * sw:sw, :])
    pat = jnp.stack(parts, axis=0)                 # (KK, N, Do, Ho, Wo, Cin)
    pat = pat.transpose(5, 0, 1, 2, 3, 4)          # (Cin, KK, N, Do, Ho, Wo)
    patches_t = pat.reshape(cin * kk_total, m)     # K order = (cin, dt, dh, dw)

    # PyTorch Conv3d weight (Cout, Cin, kd, kh, kw) flattens in the same order.
    w_t = w.reshape(cout, cin * kk_total)

    out2d = conv_matmul_lane_dense(
        w_t.astype(COMPUTE_DTYPE), patches_t.astype(COMPUTE_DTYPE), b,
        apply_relu=apply_relu, out_dtype=x.dtype)

    out = out2d.reshape(cout, n, do, ho, wo)
    return out.transpose(1, 2, 3, 4, 0)            # back to NDHWC


# ------------------------------ Encoder model --------------------------------

def _conv_init(key, out_c, in_c, k):
    """Deterministic Conv3d-style init (uniform(-1/sqrt(fan_in), 1/sqrt(fan_in)))."""
    k1, k2 = jax.random.split(key)
    fan_in = in_c * k * k * k
    bound = 1.0 / math.sqrt(fan_in)
    w = jax.random.uniform(k1, (out_c, in_c, k, k, k), jnp.float32, -bound, bound)
    b = jax.random.uniform(k2, (out_c,), jnp.float32, -bound, bound)
    return w, b


def init_encoder_params(key, n_hiddens, downsample):
    n_times = np.array([int(math.log2(d)) for d in downsample])
    max_ds = int(n_times.max())
    convs, strides = [], []
    in_channels = 3
    for i in range(max_ds):
        in_channels = 3 if i == 0 else n_hiddens
        stride = tuple(2 if d > 0 else 1 for d in n_times)
        key, sub = jax.random.split(key)
        convs.append(_conv_init(sub, n_hiddens, in_channels, 4))
        strides.append(stride)
        n_times = n_times - 1
    # Matches the reference module: conv_last reuses the final `in_channels`.
    key, sub = jax.random.split(key)
    conv_last = _conv_init(sub, n_hiddens, in_channels, 3)
    return convs, strides, conv_last


def build_encoder_forward(strides):
    strides = tuple(tuple(int(s) for s in st) for st in strides)   # static

    def forward(x_ncdhw, conv_params, last_params):
        h = jnp.transpose(x_ncdhw, (0, 2, 3, 4, 1))       # NCDHW -> NDHWC once
        for (w, b), st in zip(conv_params, strides):
            h = same_pad_conv3d_ndhwc(h, w, b, st, apply_relu=True)   # F.relu(conv(h))
        w, b = last_params
        h = same_pad_conv3d_ndhwc(h, w, b, (1, 1, 1), apply_relu=False)
        return jnp.transpose(h, (0, 4, 1, 2, 3))          # NDHWC -> NCDHW once

    return jax.jit(forward)


# ----------------------------- pure-JAX reference -----------------------------

def reference_encoder(x, convs, strides, conv_last):
    """lax.conv_general_dilated reference, for correctness checking only."""
    def conv3d_same(h, w, b, stride):
        kd, kh, kw = w.shape[2:]
        pads = []
        for k, s in zip((kd, kh, kw), stride):
            p = k - s
            pads.append((p // 2 + p % 2, p // 2))
        y = jax.lax.conv_general_dilated(
            h, w, window_strides=tuple(stride), padding=pads,
            dimension_numbers=("NCDHW", "OIDHW", "NCDHW"),
            precision=jax.lax.Precision.HIGHEST)
        return y + b.reshape(1, -1, 1, 1, 1)

    h = x
    for (w, b), s in zip(convs, strides):
        h = jax.nn.relu(conv3d_same(h, w, b, s))
    w, b = conv_last
    return conv3d_same(h, w, b, (1, 1, 1))


# ---------------------------------- main --------------------------------------

if __name__ == "__main__":
    n_hiddens = 16
    downsample = (4, 4, 4)          # max_ds = 2 -> two strided convs + conv_last

    key = jax.random.PRNGKey(0)
    kx, kp = jax.random.split(key)

    # Small NCDHW input: batch=2, channels=3, D=8, H=16, W=16.
    x = jax.random.normal(kx, (2, 3, 8, 16, 16), dtype=jnp.float32)

    convs, strides, conv_last = init_encoder_params(kp, n_hiddens, downsample)
    encoder = build_encoder_forward(strides)

    out = jax.block_until_ready(encoder(x, tuple(convs), conv_last))

    assert out.shape == (2, n_hiddens, 2, 4, 4), out.shape
    assert out.dtype == jnp.float32
    assert bool(jnp.all(jnp.isfinite(out)))

    ref = jax.block_until_ready(reference_encoder(x, convs, strides, conv_last))
    max_err = float(jnp.max(jnp.abs(out - ref)))
    assert max_err < 2e-3, max_err

    print("KERNEL_OK")
</pallas_src>

<mosaic_0001>
module attributes {stable_mosaic.version = 11 : i64} {
  func.func @_conv_mm_kernel(%arg0: i32, %arg1: i32, %arg2: memref<16x192xf32, #tpu.memory_space<vmem>>, %arg3: memref<192x256xf32, #tpu.memory_space<vmem>>, %arg4: memref<16x1xf32, #tpu.memory_space<vmem>>, %arg5: memref<16x256xf32, #tpu.memory_space<vmem>>, %arg6: memref<16x256xf32, #tpu.memory_space<vmem>>) attributes {dimension_semantics = [#tpu.dimension_semantics<parallel>, #tpu.dimension_semantics<arbitrary>], iteration_bounds = array<i64: 2, 1>, scalar_prefetch = 0 : i64, scratch_operands = 1 : i64, tpu.core_type = #tpu.core_type<tc>, window_params = [{transform_indices = @transform_0, window_bounds = array<i64: 16, 192>}, {transform_indices = @transform_1, window_bounds = array<i64: 192, 256>}, {pipeline_mode = #tpu.pipeline_mode<synchronous>, transform_indices = @transform_2, window_bounds = array<i64: 16, 1>}, {transform_indices = @transform_3, window_bounds = array<i64: 16, 256>}]} {
    %c0_i32 = arith.constant 0 : i32
    %0 = arith.cmpi eq, %arg1, %c0_i32 : i32
    %1 = arith.extui %0 : i1 to i32
    %c0_i32_0 = arith.constant 0 : i32
    %2 = arith.cmpi ne, %1, %c0_i32_0 : i32
    scf.if %2 {
      %c0_10 = arith.constant 0 : index
      %c0_11 = arith.constant 0 : index
      %12 = vector.load %arg4[%c0_10, %c0_11] : memref<16x1xf32, #tpu.memory_space<vmem>>, vector<16x1xf32>
      %13 = vector.shape_cast %12 : vector<16x1xf32> to vector<16x1xf32>
      %14 = vector.broadcast %13 : vector<16x1xf32> to vector<16x256xf32>
      %c0_12 = arith.constant 0 : index
      %c0_13 = arith.constant 0 : index
      %15 = vector.load %arg6[%c0_12, %c0_13] : memref<16x256xf32, #tpu.memory_space<vmem>>, vector<16x256xf32>
      tpu.vector_store %arg6[%c0_12, %c0_13], %14 {strides = array<i32>} : memref<16x256xf32, #tpu.memory_space<vmem>>, vector<16x256xf32>,
    } else {
    }
    %c0 = arith.constant 0 : index
    %c0_1 = arith.constant 0 : index
    %3 = vector.load %arg6[%c0, %c0_1] : memref<16x256xf32, #tpu.memory_space<vmem>>, vector<16x256xf32>
    %c0_2 = arith.constant 0 : index
    %c0_3 = arith.constant 0 : index
    %4 = vector.load %arg2[%c0_2, %c0_3] : memref<16x192xf32, #tpu.memory_space<vmem>>, vector<16x192xf32>
    %c0_4 = arith.constant 0 : index
    %c0_5 = arith.constant 0 : index
    %5 = vector.load %arg3[%c0_4, %c0_5] : memref<192x256xf32, #tpu.memory_space<vmem>>, vector<192x256xf32>
    %cst = arith.constant dense<0.000000e+00> : vector<16x256xf32>
    %6 = tpu.matmul %4, %5, %cst {dimension_numbers = #tpu.dot_dimension_numbers<[1], [0], [0], [1], [0, 0, 1, 1], [], []>} : vector<16x192xf32>, vector<192x256xf32>, vector<16x256xf32> -> vector<16x256xf32>
    %7 = arith.addf %3, %6 : vector<16x256xf32>
    %c0_6 = arith.constant 0 : index
    %c0_7 = arith.constant 0 : index
    %8 = vector.load %arg6[%c0_6, %c0_7] : memref<16x256xf32, #tpu.memory_space<vmem>>, vector<16x256xf32>
    tpu.vector_store %arg6[%c0_6, %c0_7], %7 {strides = array<i32>} : memref<16x256xf32, #tpu.memory_space<vmem>>, vector<16x256xf32>,
    %c0_i32_8 = arith.constant 0 : i32
    %9 = arith.cmpi eq, %arg1, %c0_i32_8 : i32
    %10 = arith.extui %9 : i1 to i32
    %c0_i32_9 = arith.constant 0 : i32
    %11 = arith.cmpi ne, %10, %c0_i32_9 : i32
    scf.if %11 {
      %c0_10 = arith.constant 0 : index
      %c0_11 = arith.constant 0 : index
      %12 = vector.load %arg6[%c0_10, %c0_11] : memref<16x256xf32, #tpu.memory_space<vmem>>, vector<16x256xf32>
      %cst_12 = arith.constant 0.000000e+00 : f32
      %13 = vector.broadcast %cst_12 : f32 to vector<16x256xf32>
      %14 = arith.maximumf %12, %13 : vector<16x256xf32>
      %c0_13 = arith.constant 0 : index
      %c0_14 = arith.constant 0 : index
      %15 = vector.load %arg5[%c0_13, %c0_14] : memref<16x256xf32, #tpu.memory_space<vmem>>, vector<16x256xf32>
      tpu.vector_store %arg5[%c0_13, %c0_14], %14 {strides = array<i32>} : memref<16x256xf32, #tpu.memory_space<vmem>>, vector<16x256xf32>,
    } else {
    }
    return
  }
  func.func @transform_0(%arg0: i32, %arg1: i32) -> (i32, i32) {
    %c0_i32 = arith.constant 0 : i32
    %c0_i32_0 = arith.constant 0 : i32
    return %c0_i32, %arg1 : i32, i32
  }
  func.func @transform_1(%arg0: i32, %arg1: i32) -> (i32, i32) {
    %c0_i32 = arith.constant 0 : i32
    return %arg1, %arg0 : i32, i32
  }
  func.func @transform_2(%arg0: i32, %arg1: i32) -> (i32, i32) {
    %c0_i32 = arith.constant 0 : i32
    %c0_i32_0 = arith.constant 0 : i32
    %c0_i32_1 = arith.constant 0 : i32
    return %c0_i32, %c0_i32_0 : i32, i32
  }
  func.func @transform_3(%arg0: i32, %arg1: i32) -> (i32, i32) {
    %c0_i32 = arith.constant 0 : i32
    %c0_i32_0 = arith.constant 0 : i32
    return %c0_i32, %arg0 : i32, i32
  }
}

module attributes {stable_mosaic.version = 11 : i64} {
  func.func @_conv_mm_kernel(%arg0: i32, %arg1: i32, %arg2: memref<16x1024xf32, #tpu.memory_space<vmem>>, %arg3: memref<1024x128xf32, #tpu.memory_space<vmem>>, %arg4: memref<16x1xf32, #tpu.memory_space<vmem>>, %arg5: memref<16x128xf32, #tpu.memory_space<vmem>>, %arg6: memref<16x128xf32, #tpu.memory_space<vmem>>) attributes {dimension_semantics = [#tpu.dimension_semantics<parallel>, #tpu.dimension_semantics<arbitrary>], iteration_bounds = array<i64: 1, 1>, scalar_prefetch = 0 : i64, scratch_operands = 1 : i64, tpu.core_type = #tpu.core_type<tc>, window_params = [{transform_indices = @transform_0, window_bounds = array<i64: 16, 1024>}, {transform_indices = @transform_1, window_bounds = array<i64: 1024, 128>}, {pipeline_mode = #tpu.pipeline_mode<synchronous>, transform_indices = @transform_2, window_bounds = array<i64: 16, 1>}, {transform_indices = @transform_3, window_bounds = array<i64: 16, 128>}]} {
    %c0_i32 = arith.constant 0 : i32
    %0 = arith.cmpi eq, %arg1, %c0_i32 : i32
    %1 = arith.extui %0 : i1 to i32
    %c0_i32_0 = arith.constant 0 : i32
    %2 = arith.cmpi ne, %1, %c0_i32_0 : i32
    scf.if %2 {
      %c0_10 = arith.constant 0 : index
      %c0_11 = arith.constant 0 : index
      %12 = vector.load %arg4[%c0_10, %c0_11] : memref<16x1xf32, #tpu.memory_space<vmem>>, vector<16x1xf32>
      %13 = vector.shape_cast %12 : vector<16x1xf32> to vector<16x1xf32>
      %14 = vector.broadcast %13 : vector<16x1xf32> to vector<16x128xf32>
      %c0_12 = arith.constant 0 : index
      %c0_13 = arith.constant 0 : index
      %15 = vector.load %arg6[%c0_12, %c0_13] : memref<16x128xf32, #tpu.memory_space<vmem>>, vector<16x128xf32>
      tpu.vector_store %arg6[%c0_12, %c0_13], %14 {strides = array<i32>} : memref<16x128xf32, #tpu.memory_space<vmem>>, vector<16x128xf32>,
    } else {
    }
    %c0 = arith.constant 0 : index
    %c0_1 = arith.constant 0 : index
    %3 = vector.load %arg6[%c0, %c0_1] : memref<16x128xf32, #tpu.memory_space<vmem>>, vector<16x128xf32>
    %c0_2 = arith.constant 0 : index
    %c0_3 = arith.constant 0 : index
    %4 = vector.load %arg2[%c0_2, %c0_3] : memref<16x1024xf32, #tpu.memory_space<vmem>>, vector<16x1024xf32>
    %c0_4 = arith.constant 0 : index
    %c0_5 = arith.constant 0 : index
    %5 = vector.load %arg3[%c0_4, %c0_5] : memref<1024x128xf32, #tpu.memory_space<vmem>>, vector<1024x128xf32>
    %cst = arith.constant dense<0.000000e+00> : vector<16x128xf32>
    %6 = tpu.matmul %4, %5, %cst {dimension_numbers = #tpu.dot_dimension_numbers<[1], [0], [0], [1], [0, 0, 1, 1], [], []>} : vector<16x1024xf32>, vector<1024x128xf32>, vector<16x128xf32> -> vector<16x128xf32>
    %7 = arith.addf %3, %6 : vector<16x128xf32>
    %c0_6 = arith.constant 0 : index
    %c0_7 = arith.constant 0 : index
    %8 = vector.load %arg6[%c0_6, %c0_7] : memref<16x128xf32, #tpu.memory_space<vmem>>, vector<16x128xf32>
    tpu.vector_store %arg6[%c0_6, %c0_7], %7 {strides = array<i32>} : memref<16x128xf32, #tpu.memory_space<vmem>>, vector<16x128xf32>,
    %c0_i32_8 = arith.constant 0 : i32
    %9 = arith.cmpi eq, %arg1, %c0_i32_8 : i32
    %10 = arith.extui %9 : i1 to i32
    %c0_i32_9 = arith.constant 0 : i32
    %11 = arith.cmpi ne, %10, %c0_i32_9 : i32
    scf.if %11 {
      %c0_10 = arith.constant 0 : index
      %c0_11 = arith.constant 0 : index
      %12 = vector.load %arg6[%c0_10, %c0_11] : memref<16x128xf32, #tpu.memory_space<vmem>>, vector<16x128xf32>
      %cst_12 = arith.constant 0.000000e+00 : f32
      %13 = vector.broadcast %cst_12 : f32 to vector<16x128xf32>
      %14 = arith.maximumf %12, %13 : vector<16x128xf32>
      %c0_13 = arith.constant 0 : index
      %c0_14 = arith.constant 0 : index
      %15 = vector.load %arg5[%c0_13, %c0_14] : memref<16x128xf32, #tpu.memory_space<vmem>>, vector<16x128xf32>
      tpu.vector_store %arg5[%c0_13, %c0_14], %14 {strides = array<i32>} : memref<16x128xf32, #tpu.memory_space<vmem>>, vector<16x128xf32>,
    } else {
    }
    return
  }
  func.func @transform_0(%arg0: i32, %arg1: i32) -> (i32, i32) {
    %c0_i32 = arith.constant 0 : i32
    %c0_i32_0 = arith.constant 0 : i32
    return %c0_i32, %arg1 : i32, i32
  }
  func.func @transform_1(%arg0: i32, %arg1: i32) -> (i32, i32) {
    %c0_i32 = arith.constant 0 : i32
    return %arg1, %arg0 : i32, i32
  }
  func.func @transform_2(%arg0: i32, %arg1: i32) -> (i32, i32) {
    %c0_i32 = arith.constant 0 : i32
    %c0_i32_0 = arith.constant 0 : i32
    %c0_i32_1 = arith.constant 0 : i32
    return %c0_i32, %c0_i32_0 : i32, i32
  }
  func.func @transform_3(%arg0: i32, %arg1: i32) -> (i32, i32) {
    %c0_i32 = arith.constant 0 : i32
    %c0_i32_0 = arith.constant 0 : i32
    return %c0_i32, %arg0 : i32, i32
  }
}

module attributes {stable_mosaic.version = 11 : i64} {
  func.func @_conv_mm_kernel(%arg0: i32, %arg1: i32, %arg2: memref<16x432xf32, #tpu.memory_space<vmem>>, %arg3: memref<432x128xf32, #tpu.memory_space<vmem>>, %arg4: memref<16x1xf32, #tpu.memory_space<vmem>>, %arg5: memref<16x128xf32, #tpu.memory_space<vmem>>, %arg6: memref<16x128xf32, #tpu.memory_space<vmem>>) attributes {dimension_semantics = [#tpu.dimension_semantics<parallel>, #tpu.dimension_semantics<arbitrary>], iteration_bounds = array<i64: 1, 1>, scalar_prefetch = 0 : i64, scratch_operands = 1 : i64, tpu.core_type = #tpu.core_type<tc>, window_params = [{transform_indices = @transform_0, window_bounds = array<i64: 16, 432>}, {transform_indices = @transform_1, window_bounds = array<i64: 432, 128>}, {pipeline_mode = #tpu.pipeline_mode<synchronous>, transform_indices = @transform_2, window_bounds = array<i64: 16, 1>}, {transform_indices = @transform_3, window_bounds = array<i64: 16, 128>}]} {
    %c0_i32 = arith.constant 0 : i32
    %0 = arith.cmpi eq, %arg1, %c0_i32 : i32
    %1 = arith.extui %0 : i1 to i32
    %c0_i32_0 = arith.constant 0 : i32
    %2 = arith.cmpi ne, %1, %c0_i32_0 : i32
    scf.if %2 {
      %c0_10 = arith.constant 0 : index
      %c0_11 = arith.constant 0 : index
      %12 = vector.load %arg4[%c0_10, %c0_11] : memref<16x1xf32, #tpu.memory_space<vmem>>, vector<16x1xf32>
      %13 = vector.shape_cast %12 : vector<16x1xf32> to vector<16x1xf32>
      %14 = vector.broadcast %13 : vector<16x1xf32> to vector<16x128xf32>
      %c0_12 = arith.constant 0 : index
      %c0_13 = arith.constant 0 : index
      %15 = vector.load %arg6[%c0_12, %c0_13] : memref<16x128xf32, #tpu.memory_space<vmem>>, vector<16x128xf32>
      tpu.vector_store %arg6[%c0_12, %c0_13], %14 {strides = array<i32>} : memref<16x128xf32, #tpu.memory_space<vmem>>, vector<16x128xf32>,
    } else {
    }
    %c0 = arith.constant 0 : index
    %c0_1 = arith.constant 0 : index
    %3 = vector.load %arg6[%c0, %c0_1] : memref<16x128xf32, #tpu.memory_space<vmem>>, vector<16x128xf32>
    %c0_2 = arith.constant 0 : index
    %c0_3 = arith.constant 0 : index
    %4 = vector.load %arg2[%c0_2, %c0_3] : memref<16x432xf32, #tpu.memory_space<vmem>>, vector<16x432xf32>
    %c0_4 = arith.constant 0 : index
    %c0_5 = arith.constant 0 : index
    %5 = vector.load %arg3[%c0_4, %c0_5] : memref<432x128xf32, #tpu.memory_space<vmem>>, vector<432x128xf32>
    %cst = arith.constant dense<0.000000e+00> : vector<16x128xf32>
    %6 = tpu.matmul %4, %5, %cst {dimension_numbers = #tpu.dot_dimension_numbers<[1], [0], [0], [1], [0, 0, 1, 1], [], []>} : vector<16x432xf32>, vector<432x128xf32>, vector<16x128xf32> -> vector<16x128xf32>
    %7 = arith.addf %3, %6 : vector<16x128xf32>
    %c0_6 = arith.constant 0 : index
    %c0_7 = arith.constant 0 : index
    %8 = vector.load %arg6[%c0_6, %c0_7] : memref<16x128xf32, #tpu.memory_space<vmem>>, vector<16x128xf32>
    tpu.vector_store %arg6[%c0_6, %c0_7], %7 {strides = array<i32>} : memref<16x128xf32, #tpu.memory_space<vmem>>, vector<16x128xf32>,
    %c0_i32_8 = arith.constant 0 : i32
    %9 = arith.cmpi eq, %arg1, %c0_i32_8 : i32
    %10 = arith.extui %9 : i1 to i32
    %c0_i32_9 = arith.constant 0 : i32
    %11 = arith.cmpi ne, %10, %c0_i32_9 : i32
    scf.if %11 {
      %c0_10 = arith.constant 0 : index
      %c0_11 = arith.constant 0 : index
      %12 = vector.load %arg6[%c0_10, %c0_11] : memref<16x128xf32, #tpu.memory_space<vmem>>, vector<16x128xf32>
      %c0_12 = arith.constant 0 : index
      %c0_13 = arith.constant 0 : index
      %13 = vector.load %arg5[%c0_12, %c0_13] : memref<16x128xf32, #tpu.memory_space<vmem>>, vector<16x128xf32>
      tpu.vector_store %arg5[%c0_12, %c0_13], %12 {strides = array<i32>} : memref<16x128xf32, #tpu.memory_space<vmem>>, vector<16x128xf32>,
    } else {
    }
    return
  }
  func.func @transform_0(%arg0: i32, %arg1: i32) -> (i32, i32) {
    %c0_i32 = arith.constant 0 : i32
    %c0_i32_0 = arith.constant 0 : i32
    return %c0_i32, %arg1 : i32, i32
  }
  func.func @transform_1(%arg0: i32, %arg1: i32) -> (i32, i32) {
    %c0_i32 = arith.constant 0 : i32
    return %arg1, %arg0 : i32, i32
  }
  func.func @transform_2(%arg0: i32, %arg1: i32) -> (i32, i32) {
    %c0_i32 = arith.constant 0 : i32
    %c0_i32_0 = arith.constant 0 : i32
    %c0_i32_1 = arith.constant 0 : i32
    return %c0_i32, %c0_i32_0 : i32, i32
  }
  func.func @transform_3(%arg0: i32, %arg1: i32) -> (i32, i32) {
    %c0_i32 = arith.constant 0 : i32
    %c0_i32_0 = arith.constant 0 : i32
    return %c0_i32, %arg0 : i32, i32
  }
}

</mosaic_0001>

<bundles_post_ra>
// kernel: forward.3
= control target key start
LH: loop header
LB: loop body
LE: loop exit
PB: predicated region body
PF: predicated region fallthrough
CT: control target
= control target key end

     0   :  { %s815_s12 = smov 0   ;;  %s817_s13 = smov 0   ;;  %s1059_s0 = inlined_call_operand.vmem [shape: f32[16,192], index: 0, kind: input, shape index: {}]   ;;  %s1060_s1 = inlined_call_operand.vmem [shape: f32[192,512], index: 1, kind: input, shape index: {}]   ;;  %s1061_s2 = inlined_call_operand.vmem [shape: f32[16,1], index: 2, kind: input, shape index: {}]   ;;  %s1062_s3 = inlined_call_operand.vmem [shape: f32[16,512], index: 3, kind: output, shape index: {}]  }
   0x1   :  { %s819_s14 = smov 0   ;;  %s821_s15 = smov 0  }
   0x2   :  { %s823_s16 = smov 0  }
   0x3 LB: > { %s25_s17 = sadd.s32 1, %s788_s15  ;;  %s620_s18 = sadd.s32 4294967295, %s792_s16   ;;  %s792_s16 = sphi %s823_s16, %s13_s16   ;;  %s788_s15 = sphi %s821_s15, %s1067_s15   ;;  %s784_s14 = sphi %s819_s14, %s1066_s14   ;;  %s780_s13 = sphi %s817_s13, %s1065_s13   ;;  %s776_s12 = sphi %s815_s12, %s1064_s12  }
   0x4   : > { %p27_p0 = scmp.ge.s32.totalorder %s25_s17, 2  ;;  %p67_p1 = scmp.ne.s32.totalorder %s780_s13, %s776_s12 }
   0x5   : > { %p68_p2 = scmp.eq.s32.totalorder %s792_s16, 0  ;;  %p118_p4 = scmp.eq.s32.totalorder %s620_s18, 1 }
   0x6   : > { %s1069_s17 = smov (%p27_p0, %s25_s17), 0  ;;  %s60_s20 = sadd.s32 1, %s780_s13 }
   0x7   : > { %p69_p3 = por %p68_p2, %p67_p1  ;;  %s56_s19 = ssub.s32 %s788_s15, %s1069_s17 }
   0x8   : > { %p58_p5 = scmp.eq.s32.totalorder %s56_s19, 0  ;;  %p850_p6 = por %p118_p4, %p67_p1 }
   0x9   : > { %p624_p7 = scmp.ge.s32.totalorder %s792_s16, 2 }
   0xa   : > { %s855_s22 = scalar_select %p58_p5, %s780_s13, %s60_s20  }
   0xb   : > { %152 = sbr.rel (%p624_p7) target bundleno = 46 (0x2e), region = 24 }
  0x12   : > { %155 = sbr.rel (!%p69_p3) target bundleno = 46 (0x2e), region = 28  ;;  %s157_s23 = sand.u32 (%p69_p3), 1, %s780_s13  }
  0x13   : > { %s636_s24 = sshll.u32 (%p69_p3), %s788_s15, 4  ;;  %s710_s25 = smul.u32 (%p69_p3), 384, %s157_s23 }
  0x14   : > { %s863_s28 = scalar_lea.vmem (%p69_p3), %s1060_s1, %s636_s24 }
  0x15   : > { %v178_v0 = vld [vmem:[%s863_s28] sm:$0xff] (%p69_p3)  ;;  %v180_v1 = vld [vmem:[%s863_s28 + $0x8] sm:$0xff] (%p69_p3)  ;;  %s871_s29 = scalar_lea.vmem (%p69_p3), [#allocation3], %s710_s25 }
  0x16   : > { %v182_v2 = vld [vmem:[%s863_s28 + $0x20] sm:$0xff] (%p69_p3)  ;;  %v184_v3 = vld [vmem:[%s863_s28 + $0x28] sm:$0xff] (%p69_p3)  ;;  %179 = vst [vmem:[%s871_s29] sm:$0xff] (%p69_p3), %v178_v0  ;;  %181 = vst [vmem:[%s871_s29 + $0x8] sm:$0xff] (%p69_p3), %v180_v1 }
  0x17   : > { %v186_v4 = vld [vmem:[%s863_s28 + $0x40] sm:$0xff] (%p69_p3)  ;;  %v188_v5 = vld [vmem:[%s863_s28 + $0x48] sm:$0xff] (%p69_p3)  ;;  %183 = vst [vmem:[%s871_s29 + $0x10] sm:$0xff] (%p69_p3), %v182_v2  ;;  %185 = vst [vmem:[%s871_s29 + $0x18] sm:$0xff] (%p69_p3), %v184_v3 }
  0x18   : > { %187 = vst [vmem:[%s871_s29 + $0x20] sm:$0xff] (%p69_p3), %v186_v4  ;;  %189 = vst [vmem:[%s871_s29 + $0x28] sm:$0xff] (%p69_p3), %v188_v5  ;;  %v190_v6 = vld [vmem:[%s863_s28 + $0x60] sm:$0xff] (%p69_p3)  ;;  %v192_v7 = vld [vmem:[%s863_s28 + $0x68] sm:$0xff] (%p69_p3) }
  0x19   : > { %v194_v8 = vld [vmem:[%s863_s28 + $0x80] sm:$0xff]  ;;  %191 = vst [vmem:[%s871_s29 + $0x30] sm:$0xff] %v190_v6  ;;  %193 = vst [vmem:[%s871_s29 + $0x38] sm:$0xff] %v192_v7  ;;  %v196_v9 = vld [vmem:[%s863_s28 + $0x88] sm:$0xff] }
  0x1a   : > { %195 = vst [vmem:[%s871_s29 + $0x40] sm:$0xff] %v194_v8  ;;  %v198_v10 = vld [vmem:[%s863_s28 + $0xa0] sm:$0xff]  ;;  %v200_v11 = vld [vmem:[%s863_s28 + $0xa8] sm:$0xff]  ;;  %197 = vst [vmem:[%s871_s29 + $0x48] sm:$0xff] %v196_v9 }
  0x1b   : > { %199 = vst [vmem:[%s871_s29 + $0x50] sm:$0xff] %v198_v10  ;;  %201 = vst [vmem:[%s871_s29 + $0x58] sm:$0xff] %v200_v11  ;;  %v202_v12 = vld [vmem:[%s863_s28 + $0xc0] sm:$0xff]  ;;  %v204_v13 = vld [vmem:[%s863_s28 + $0xc8] sm:$0xff] }
  0x1c   : > { %v206_v14 = vld [vmem:[%s863_s28 + $0xe0] sm:$0xff]  ;;  %203 = vst [vmem:[%s871_s29 + $0x60] sm:$0xff] %v202_v12  ;;  %205 = vst [vmem:[%s871_s29 + $0x68] sm:$0xff] %v204_v13  ;;  %v208_v15 = vld [vmem:[%s863_s28 + $0xe8] sm:$0xff] }
  0x1d   : > { %207 = vst [vmem:[%s871_s29 + $0x70] sm:$0xff] %v206_v14  ;;  %v210_v16 = vld [vmem:[%s863_s28 + $0x100] sm:$0xff]  ;;  %v212_v17 = vld [vmem:[%s863_s28 + $0x108] sm:$0xff]  ;;  %209 = vst [vmem:[%s871_s29 + $0x78] sm:$0xff] %v208_v15 }
  0x1e   : > { %211 = vst [vmem:[%s871_s29 + $0x80] sm:$0xff] %v210_v16  ;;  %213 = vst [vmem:[%s871_s29 + $0x88] sm:$0xff] %v212_v17  ;;  %v214_v18 = vld [vmem:[%s863_s28 + $0x120] sm:$0xff]  ;;  %v216_v19 = vld [vmem:[%s863_s28 + $0x128] sm:$0xff] }
  0x1f   : > { %v218_v20 = vld [vmem:[%s863_s28 + $0x140] sm:$0xff]  ;;  %215 = vst [vmem:[%s871_s29 + $0x90] sm:$0xff] %v214_v18  ;;  %217 = vst [vmem:[%s871_s29 + $0x98] sm:$0xff] %v216_v19  ;;  %v220_v21 = vld [vmem:[%s863_s28 + $0x148] sm:$0xff] }
  0x20   : > { %219 = vst [vmem:[%s871_s29 + $0xa0] sm:$0xff] %v218_v20  ;;  %v222_v22 = vld [vmem:[%s863_s28 + $0x160] sm:$0xff]  ;;  %v224_v23 = vld [vmem:[%s863_s28 + $0x168] sm:$0xff]  ;;  %221 = vst [vmem:[%s871_s29 + $0xa8] sm:$0xff] %v220_v21 }
  0x21   : > { %223 = vst [vmem:[%s871_s29 + $0xb0] sm:$0xff] %v222_v22  ;;  %225 = vst [vmem:[%s871_s29 + $0xb8] sm:$0xff] %v224_v23  ;;  %v226_v24 = vld [vmem:[%s863_s28 + $0x180] sm:$0xff]  ;;  %v228_v25 = vld [vmem:[%s863_s28 + $0x188] sm:$0xff] }
  0x22   : > { %v230_v26 = vld [vmem:[%s863_s28 + $0x1a0] sm:$0xff]  ;;  %227 = vst [vmem:[%s871_s29 + $0xc0] sm:$0xff] %v226_v24  ;;  %229 = vst [vmem:[%s871_s29 + $0xc8] sm:$0xff] %v228_v25  ;;  %v232_v27 = vld [vmem:[%s863_s28 + $0x1a8] sm:$0xff] }
  0x23   : > { %231 = vst [vmem:[%s871_s29 + $0xd0] sm:$0xff] %v230_v26  ;;  %v234_v28 = vld [vmem:[%s863_s28 + $0x1c0] sm:$0xff]  ;;  %v236_v29 = vld [vmem:[%s863_s28 + $0x1c8] sm:$0xff]  ;;  %233 = vst [vmem:[%s871_s29 + $0xd8] sm:$0xff] %v232_v27 }
  0x24   : > { %235 = vst [vmem:[%s871_s29 + $0xe0] sm:$0xff] %v234_v28  ;;  %237 = vst [vmem:[%s871_s29 + $0xe8] sm:$0xff] %v236_v29  ;;  %v238_v30 = vld [vmem:[%s863_s28 + $0x1e0] sm:$0xff]  ;;  %v240_v31 = vld [vmem:[%s863_s28 + $0x1e8] sm:$0xff] }
  0x25   : > { %v242_v32 = vld [vmem:[%s863_s28 + $0x200] sm:$0xff]  ;;  %239 = vst [vmem:[%s871_s29 + $0xf0] sm:$0xff] %v238_v30  ;;  %241 = vst [vmem:[%s871_s29 + $0xf8] sm:$0xff] %v240_v31  ;;  %v244_v33 = vld [vmem:[%s863_s28 + $0x208] sm:$0xff] }
  0x26   : > { %243 = vst [vmem:[%s871_s29 + $0x100] sm:$0xff] %v242_v32  ;;  %v246_v34 = vld [vmem:[%s863_s28 + $0x220] sm:$0xff]  ;;  %v248_v35 = vld [vmem:[%s863_s28 + $0x228] sm:$0xff]  ;;  %245 = vst [vmem:[%s871_s29 + $0x108] sm:$0xff] %v244_v33 }
  0x27   : > { %247 = vst [vmem:[%s871_s29 + $0x110] sm:$0xff] %v246_v34  ;;  %249 = vst [vmem:[%s871_s29 + $0x118] sm:$0xff] %v248_v35  ;;  %v250_v36 = vld [vmem:[%s863_s28 + $0x240] sm:$0xff]  ;;  %v252_v37 = vld [vmem:[%s863_s28 + $0x248] sm:$0xff] }
  0x28   : > { %v254_v38 = vld [vmem:[%s863_s28 + $0x260] sm:$0xff]  ;;  %251 = vst [vmem:[%s871_s29 + $0x120] sm:$0xff] %v250_v36  ;;  %253 = vst [vmem:[%s871_s29 + $0x128] sm:$0xff] %v252_v37  ;;  %v256_v39 = vld [vmem:[%s863_s28 + $0x268] sm:$0xff] }
  0x29   : > { %255 = vst [vmem:[%s871_s29 + $0x130] sm:$0xff] %v254_v38  ;;  %v258_v40 = vld [vmem:[%s863_s28 + $0x280] sm:$0xff]  ;;  %v260_v41 = vld [vmem:[%s863_s28 + $0x288] sm:$0xff]  ;;  %257 = vst [vmem:[%s871_s29 + $0x138] sm:$0xff] %v256_v39 }
  0x2a   : > { %259 = vst [vmem:[%s871_s29 + $0x140] sm:$0xff] %v258_v40  ;;  %261 = vst [vmem:[%s871_s29 + $0x148] sm:$0xff] %v260_v41  ;;  %v262_v42 = vld [vmem:[%s863_s28 + $0x2a0] sm:$0xff]  ;;  %v264_v43 = vld [vmem:[%s863_s28 + $0x2a8] sm:$0xff] }
  0x2b   : > { %v266_v44 = vld [vmem:[%s863_s28 + $0x2c0] sm:$0xff]  ;;  %263 = vst [vmem:[%s871_s29 + $0x150] sm:$0xff] %v262_v42  ;;  %265 = vst [vmem:[%s871_s29 + $0x158] sm:$0xff] %v264_v43  ;;  %v268_v45 = vld [vmem:[%s863_s28 + $0x2c8] sm:$0xff] }
  0x2c   : > { %267 = vst [vmem:[%s871_s29 + $0x160] sm:$0xff] %v266_v44  ;;  %v270_v46 = vld [vmem:[%s863_s28 + $0x2e0] sm:$0xff]  ;;  %v272_v47 = vld [vmem:[%s863_s28 + $0x2e8] sm:$0xff]  ;;  %269 = vst [vmem:[%s871_s29 + $0x168] sm:$0xff] %v268_v45 }
  0x2d   : > { %271 = vst [vmem:[%s871_s29 + $0x170] sm:$0xff] %v270_v46  ;;  %273 = vst [vmem:[%s871_s29 + $0x178] sm:$0xff] %v272_v47 }
  0x2e PF: > { %p627_p8 = scmp.ge.s32.totalorder %s792_s16, 1  ;;  %p278_p9 = scmp.lt.s32.totalorder %s792_s16, 3 }
  0x30   : > { %p279_p10 = pnand %p627_p8, %p278_p9 }
  0x31   : > { %s285_s30 = sand.u32 (!%p279_p10), 1, %s776_s12   ;;  %v346_v48 = vld [vmem:[%s1059_s0 + $0x8] sm:$0xff] (!%p279_p10)  ;;  %vm397_vm0 = vcmask (!%p279_p10), 523264   ;;  %v348_v49 = vld [vmem:[%s1059_s0 + $0x18] sm:$0xff] (!%p279_p10)  ;;  %v325_v50 = vld [vmem:[%s1061_s2] sm:$0xff] (!%p279_p10)  ;;  %v794_v51 = vmov (!%p279_p10), 0  }
  0x32   : > { %282 = sbr.rel (%p279_p10) target bundleno = 331 (0x14b), region = 51  ;;  %629 = vmatprep.mubr.msk.f32.mxu0 (!%p279_p10), %vm397_vm0, %v346_v48  ;;  %630 = vmatprep.mubr.msk.f32.mxu1 (!%p279_p10), %vm397_vm0, %v348_v49  ;;  %v326_v1 = vld [vmem:[%s1061_s2 + $0x8] sm:$0xff] (!%p279_p10)  ;;  %s628_s26 = sshll.u32 (!%p279_p10), %s285_s30, 5 }
  0x33   : > { %s711_s8 = smul.u32 (!%p279_p10), 384, %s285_s30  ;;  %753 = vset.pattern.permute.xlu0 (!%p279_p10), %v794_v51  ;;  %s311_s27 = scalar_lea.vmem (!%p279_p10), [#allocation4], %s628_s26 }
  0x34   : > { %329 = vperm.xlu0 (!%p279_p10), %753, %v325_v50  }
  0x35   : > { %s977_s11 = scalar_lea.vmem (!%p279_p10), [#allocation3], %s711_s8 }
  0x36   : > { %v350_v52 = vld [vmem:[%s977_s11 + $0x8] sm:$0xff] (!%p279_p10)  ;;  %v352_v53 = vld [vmem:[%s977_s11 + $0x18] sm:$0xff] (!%p279_p10)  ;;  %v349_v54 = vld [vmem:[%s977_s11] sm:$0xff] (!%p279_p10) }
  0x37   : > { %v638_v55 = vpack.c.bf16 (!%p279_p10), %v352_v53, %v350_v52  ;;  %v351_v56 = vld [vmem:[%s977_s11 + $0x10] sm:$0xff] (!%p279_p10)  ;;  %v354_v57 = vld [vmem:[%s977_s11 + $0x28] sm:$0xff] (!%p279_p10)  ;;  %v356_v58 = vld [vmem:[%s977_s11 + $0x38] sm:$0xff] (!%p279_p10) }
  0x38   : > { %v640_v59 = vpack.c.bf16 (!%p279_p10), %v351_v56, %v349_v54  ;;  %v642_v60 = vpack.c.bf16 (!%p279_p10), %v356_v58, %v354_v57  ;;  %v353_v61 = vld [vmem:[%s977_s11 + $0x20] sm:$0xff] (!%p279_p10)  ;;  %v355_v62 = vld [vmem:[%s977_s11 + $0x30] sm:$0xff] (!%p279_p10)  ;;  %v358_v63 = vld [vmem:[%s977_s11 + $0x48] sm:$0xff] (!%p279_p10)  ;;  %334 = vperm.xlu0 (!%p279_p10), %753, %v326_v1  }
  0x39   : > { %639 = vmatprep.subr.bf16.mxu0 %v638_v55  ;;  %686 = vmatprep.subr.bf16.mxu1 %v638_v55  ;;  %v360_v0 = vld [vmem:[%s977_s11 + $0x58] sm:$0xff]  ;;  %v644_v2 = vpack.c.bf16 %v355_v62, %v353_v61  ;;  %v357_v4 = vld [vmem:[%s977_s11 + $0x40] sm:$0xff]  ;;  %v359_v5 = vld [vmem:[%s977_s11 + $0x50] sm:$0xff]  ;;  %s637_s12 = sshll.u32 (%p850_p6), %s784_s14, 4 }
  0x3a   : > { %641 = vmatpush1.bf16.msra.mxu0 %v640_v59  ;;  %698 = vmatpush1.bf16.msra.mxu1 %v640_v59  ;;  %v646_v3 = vpack.c.bf16 %v360_v0, %v358_v63  ;;  %v362_v6 = vld [vmem:[%s977_s11 + $0x68] sm:$0xff]  ;;  %v364_v7 = vld [vmem:[%s977_s11 + $0x78] sm:$0xff]  ;;  %v648_v8 = vpack.c.bf16 %v359_v5, %v357_v4  ;;  %v361_v10 = vld [vmem:[%s977_s11 + $0x60] sm:$0xff]  ;;  %s513_s30 = scalar_lea.vmem (%p850_p6), %s1062_s3, %s637_s12 }
  0x3b   : > { %643 = vmatprep.subr.bf16.mxu0 %v642_v60  ;;  %687 = vmatprep.subr.bf16.mxu1 %v642_v60  ;;  %v650_v9 = vpack.c.bf16 %v364_v7, %v362_v6  ;;  %v363_v11 = vld [vmem:[%s977_s11 + $0x70] sm:$0xff]  ;;  %v366_v12 = vld [vmem:[%s977_s11 + $0x88] sm:$0xff]  ;;  %v368_v13 = vld [vmem:[%s977_s11 + $0x98] sm:$0xff] }
  0x3c   : > { %v652_v14 = vpack.c.bf16 %v363_v11, %v361_v10  ;;  %v654_v15 = vpack.c.bf16 %v368_v13, %v366_v12  ;;  %v365_v16 = vld [vmem:[%s977_s11 + $0x80] sm:$0xff]  ;;  %v367_v17 = vld [vmem:[%s977_s11 + $0x90] sm:$0xff]  ;;  %v370_v18 = vld [vmem:[%s977_s11 + $0xa8] sm:$0xff] }
  0x3d   : > { %v372_v19 = vld [vmem:[%s977_s11 + $0xb8] sm:$0xff]  ;;  %v656_v20 = vpack.c.bf16 %v367_v17, %v365_v16  ;;  %v369_v22 = vld [vmem:[%s977_s11 + $0xa0] sm:$0xff]  ;;  %v371_v23 = vld [vmem:[%s977_s11 + $0xb0] sm:$0xff] }
  0x3e   : > { %645 = vmatpush1.bf16.msra.mxu0 %v644_v2  ;;  %699 = vmatpush1.bf16.msra.mxu1 %v644_v2  ;;  %v658_v21 = vpack.c.bf16 %v372_v19, %v370_v18  ;;  %v374_v24 = vld [vmem:[%s977_s11 + $0xc8] sm:$0xff]  ;;  %v376_v25 = vld [vmem:[%s977_s11 + $0xd8] sm:$0xff]  ;;  %v660_v26 = vpack.c.bf16 %v371_v23, %v369_v22  ;;  %v373_v28 = vld [vmem:[%s977_s11 + $0xc0] sm:$0xff] }
  0x3f   : > { %647 = vmatprep.subr.bf16.mxu0 %v646_v3  ;;  %688 = vmatprep.subr.bf16.mxu1 %v646_v3  ;;  %v662_v27 = vpack.c.bf16 %v376_v25, %v374_v24  ;;  %v375_v29 = vld [vmem:[%s977_s11 + $0xd0] sm:$0xff]  ;;  %v378_v30 = vld [vmem:[%s977_s11 + $0xe8] sm:$0xff]  ;;  %v380_v31 = vld [vmem:[%s977_s11 + $0xf8] sm:$0xff] }
  0x40   : > { %v664_v32 = vpack.c.bf16 %v375_v29, %v373_v28  ;;  %v666_v33 = vpack.c.bf16 %v380_v31, %v378_v30  ;;  %v377_v34 = vld [vmem:[%s977_s11 + $0xe0] sm:$0xff]  ;;  %v379_v35 = vld [vmem:[%s977_s11 + $0xf0] sm:$0xff]  ;;  %v382_v36 = vld [vmem:[%s977_s11 + $0x108] sm:$0xff] }
  0x41   : > { %v384_v37 = vld [vmem:[%s977_s11 + $0x118] sm:$0xff]  ;;  %v668_v38 = vpack.c.bf16 %v379_v35, %v377_v34  ;;  %v381_v40 = vld [vmem:[%s977_s11 + $0x100] sm:$0xff]  ;;  %v383_v41 = vld [vmem:[%s977_s11 + $0x110] sm:$0xff] }
  0x42   : > { %649 = vmatpush1.bf16.msra.mxu0 %v648_v8  ;;  %700 = vmatpush1.bf16.msra.mxu1 %v648_v8  ;;  %v670_v39 = vpack.c.bf16 %v384_v37, %v382_v36  ;;  %v386_v42 = vld [vmem:[%s977_s11 + $0x128] sm:$0xff]  ;;  %v388_v43 = vld [vmem:[%s977_s11 + $0x138] sm:$0xff]  ;;  %v672_v44 = vpack.c.bf16 %v383_v41, %v381_v40  ;;  %v385_v46 = vld [vmem:[%s977_s11 + $0x120] sm:$0xff] }
  0x43   : > { %651 = vmatprep.subr.bf16.mxu0 %v650_v9  ;;  %689 = vmatprep.subr.bf16.mxu1 %v650_v9  ;;  %v674_v45 = vpack.c.bf16 %v388_v43, %v386_v42  ;;  %v387_v47 = vld [vmem:[%s977_s11 + $0x130] sm:$0xff]  ;;  %v390_v48 = vld [vmem:[%s977_s11 + $0x148] sm:$0xff]  ;;  %v392_v49 = vld [vmem:[%s977_s11 + $0x158] sm:$0xff] }
  0x44   : > { %v676_v50 = vpack.c.bf16 %v387_v47, %v385_v46  ;;  %v678_v51 = vpack.c.bf16 %v392_v49, %v390_v48  ;;  %v389_v52 = vld [vmem:[%s977_s11 + $0x140] sm:$0xff]  ;;  %v391_v53 = vld [vmem:[%s977_s11 + $0x150] sm:$0xff]  ;;  %v394_v54 = vld [vmem:[%s977_s11 + $0x168] sm:$0xff] }
  0x45   : > { %v396_v55 = vld [vmem:[%s977_s11 + $0x178] sm:$0xff]  ;;  %v680_v56 = vpack.c.bf16 %v391_v53, %v389_v52  ;;  %v393_v58 = vld [vmem:[%s977_s11 + $0x160] sm:$0xff]  ;;  %v395_v59 = vld [vmem:[%s977_s11 + $0x170] sm:$0xff] }
  0x46   : > { %653 = vmatpush1.bf16.msra.mxu0 %v652_v14  ;;  %701 = vmatpush1.bf16.msra.mxu1 %v652_v14  ;;  %v682_v57 = vpack.c.bf16 %v396_v55, %v394_v54  ;;  %v684_v60 = vpack.c.bf16 %v395_v59, %v393_v58  ;;  %v345_v61 = vld [vmem:[%s1059_s0] sm:$0xff]  ;;  %v347_v62 = vld [vmem:[%s1059_s0 + $0x10] sm:$0xff] }
  0x47   : > { %655 = vmatprep.subr.bf16.mxu0 %v654_v15  ;;  %690 = vmatprep.subr.bf16.mxu1 %v654_v15 }
  0x4a   : > { %657 = vmatpush1.bf16.msra.mxu0 %v656_v20  ;;  %702 = vmatpush1.bf16.msra.mxu1 %v656_v20 }
  0x4b   : > { %659 = vmatprep.subr.bf16.mxu0 %v658_v21  ;;  %691 = vmatprep.subr.bf16.mxu1 %v658_v21 }
  0x4e   : > { %661 = vmatpush1.bf16.msra.mxu0 %v660_v26  ;;  %703 = vmatpush1.bf16.msra.mxu1 %v660_v26 }
  0x4f   : > { %663 = vmatprep.subr.bf16.mxu0 %v662_v27  ;;  %692 = vmatprep.subr.bf16.mxu1 %v662_v27 }
  0x52   : > { %665 = vmatpush1.bf16.msra.mxu0 %v664_v32  ;;  %704 = vmatpush1.bf16.msra.mxu1 %v664_v32 }
  0x53   : > { %667 = vmatprep.subr.bf16.mxu0 %v666_v33  ;;  %693 = vmatprep.subr.bf16.mxu1 %v666_v33 }
  0x56   : > { %669 = vmatpush1.bf16.msra.mxu0 %v668_v38  ;;  %705 = vmatpush1.bf16.msra.mxu1 %v668_v38 }
  0x57   : > { %671 = vmatprep.subr.bf16.mxu0 %v670_v39  ;;  %694 = vmatprep.subr.bf16.mxu1 %v670_v39 }
  0x5a   : > { %673 = vmatpush1.bf16.msra.mxu0 %v672_v44  ;;  %706 = vmatpush1.bf16.msra.mxu1 %v672_v44 }
  0x5b   : > { %675 = vmatprep.subr.bf16.mxu0 %v674_v45  ;;  %695 = vmatprep.subr.bf16.mxu1 %v674_v45 }
  0x5e   : > { %677 = vmatpush1.bf16.msra.mxu0 %v676_v50  ;;  %707 = vmatpush1.bf16.msra.mxu1 %v676_v50 }
  0x5f   : > { %679 = vmatprep.subr.bf16.mxu0 %v678_v51  ;;  %696 = vmatprep.subr.bf16.mxu1 %v678_v51 }
  0x62   : > { %681 = vmatpush1.bf16.msra.mxu0 %v680_v56  ;;  %708 = vmatpush1.bf16.msra.mxu1 %v680_v56 }
  0x63   : > { %683 = vmatprep.subr.bf16.mxu0 %v682_v57  ;;  %697 = vmatprep.subr.bf16.mxu1 %v682_v57 }
  0x66   : > { %685 = vmatpush1.bf16.msra.mxu0 %v684_v60  ;;  %709 = vmatpush1.bf16.msra.mxu1 %v684_v60 }
  0x69   : > { %469 = vmatmul.mubr.f32.vlgmr.msra.gmra.mrb[0].mxu0 %v345_v61  ;;  %475 = vmatmul.mubr.f32.vlgmr.msra.gmra.mrb[0].mxu1 %v347_v62 }
  0xb3   : > { %v330_v63 = vpop.permute.xlu0 %329 }
  0xb7   : > { %v335_v0 = vpop.permute.xlu0 %334 }
 0x13c   : > { %v470_v1 = vpop.f32.mrb[0].mxu0  ;;  %v476_v2 = vpop.f32.mrb[0].mxu1  ;;  %510 = sbr.rel (!%p850_p6) target bundleno = 331 (0x14b), region = 67 }
 0x13d   : > { %v481_v3 = vadd.f32 %v470_v1, %v330_v63  ;;  %v483_v4 = vadd.f32 %v476_v2, %v335_v0  ;;  %v472_v5 = vpop.f32.mrb[1].mxu0  ;;  %v478_v6 = vpop.f32.mrb[1].mxu1 }
 0x13e   : > { %v482_v7 = vadd.f32 %v472_v5, %v330_v63  ;;  %v484_v8 = vadd.f32 %v478_v6, %v335_v0 }
 0x13f   : > { %v496_v9 = vmax.f32 %v481_v3, 0.0  ;;  %v498_v10 = vmax.f32 %v483_v4, 0.0 }
 0x140   : > { %v497_v11 = vmax.f32 %v482_v7, 0.0  ;;  %v499_v12 = vmax.f32 %v484_v8, 0.0 }
 0x141   : > { %500 = vst [vmem:[%s311_s27] sm:$0xff] %v496_v9  ;;  %502 = vst [vmem:[%s311_s27 + $0x10] sm:$0xff] %v498_v10 }
 0x142   : > { %501 = vst [vmem:[%s311_s27 + $0x8] sm:$0xff] %v497_v11  ;;  %503 = vst [vmem:[%s311_s27 + $0x18] sm:$0xff] %v499_v12 }
 0x148   : > { %v526_v13 = vld [vmem:[%s311_s27] sm:$0xff]  ;;  %v530_v15 = vld [vmem:[%s311_s27 + $0x10] sm:$0xff] }
 0x149   : > { %v528_v14 = vld [vmem:[%s311_s27 + $0x8] sm:$0xff]  ;;  %v532_v16 = vld [vmem:[%s311_s27 + $0x18] sm:$0xff]  ;;  %527 = vst [vmem:[%s513_s30] sm:$0xff] %v526_v13  ;;  %531 = vst [vmem:[%s513_s30 + $0x20] sm:$0xff] %v530_v15 }
 0x14a   : > { %529 = vst [vmem:[%s513_s30 + $0x8] sm:$0xff] %v528_v14  ;;  %533 = vst [vmem:[%s513_s30 + $0x28] sm:$0xff] %v532_v16 }
 0x14b PF: > { %s13_s16 = sadd.s32 1, %s792_s16   ;;  %s1064_s12 = smov %s780_s13 }
 0x14c   : > { %p10_p11 = scmp.ge.s32.totalorder %s13_s16, 4   ;;  %s1065_s13 = smov %s855_s22 }
 0x14d   : > { %s1066_s14 = smov %s788_s15  ;;  %s1067_s15 = smov %s1069_s17 }
 0x14e   :  { %12 = sbr.rel (!%p10_p11) target bundleno = 3 (0x3), region = 124 }

// kernel: forward.4
= control target key start
LH: loop header
LB: loop body
LE: loop exit
PB: predicated region body
PF: predicated region fallthrough
CT: control target
= control target key end

     0   :  { %v777_v3 = vmov 0   ;;  %s1242_s1 = inlined_call_operand.vmem [shape: f32[1024,128], index: 1, kind: input, shape index: {}]   ;;  %s1243_s0 = inlined_call_operand.vmem [shape: f32[16,1024], index: 0, kind: input, shape index: {}]   ;;  %s1244_s2 = inlined_call_operand.vmem [shape: f32[16,1], index: 2, kind: input, shape index: {}]   ;;  %s1245_s3 = inlined_call_operand.vmem [shape: f32[16,128], index: 3, kind: output, shape index: {}]  }
   0x1   :  { %v66_v0 = vld [vmem:[%s1242_s1 + $0x80] sm:$0xff]  ;;  %v67_v1 = vld [vmem:[%s1242_s1 + $0x88] sm:$0xff]  ;;  %776 = vset.pattern.permute.xlu0 %v777_v3  ;;  %v68_v12 = vld [vmem:[%s1242_s1 + $0x90] sm:$0xff] }
   0x2   :  { %v98_v2 = vld [vmem:[%s1242_s1 + $0x180] sm:$0xff]  ;;  %v647_v4 = vpack.c.bf16 %v67_v1, %v66_v0  ;;  %v99_v5 = vld [vmem:[%s1242_s1 + $0x188] sm:$0xff]  ;;  %v69_v14 = vld [vmem:[%s1242_s1 + $0x98] sm:$0xff] }
   0x3   :  { %v50_v6 = vld [vmem:[%s1242_s1] sm:$0xff]  ;;  %v51_v7 = vld [vmem:[%s1242_s1 + $0x8] sm:$0xff]  ;;  %v679_v8 = vpack.c.bf16 %v99_v5, %v98_v2  ;;  %v100_v15 = vld [vmem:[%s1242_s1 + $0x190] sm:$0xff]  ;;  %v651_v17 = vpack.c.bf16 %v69_v14, %v68_v12 }
   0x4   :  { %v649_v9 = vpack.c.bf16 %v51_v7, %v50_v6  ;;  %v82_v10 = vld [vmem:[%s1242_s1 + $0x100] sm:$0xff]  ;;  %v83_v11 = vld [vmem:[%s1242_s1 + $0x108] sm:$0xff]  ;;  %648 = vmatprep.subr.bf16.mxu0 %v647_v4  ;;  %v101_v16 = vld [vmem:[%s1242_s1 + $0x198] sm:$0xff] }
   0x5   :  { %v681_v13 = vpack.c.bf16 %v83_v11, %v82_v10  ;;  %680 = vmatprep.subr.bf16.mxu1 %v679_v8  ;;  %v683_v18 = vpack.c.bf16 %v101_v16, %v100_v15  ;;  %v52_v19 = vld [vmem:[%s1242_s1 + $0x10] sm:$0xff]  ;;  %v53_v20 = vld [vmem:[%s1242_s1 + $0x18] sm:$0xff]  ;;  %v70_v24 = vld [vmem:[%s1242_s1 + $0xa0] sm:$0xff] }
   0x6   :  { %650 = vmatpush3.bf16.msra.mxu0 %v649_v9  ;;  %v84_v21 = vld [vmem:[%s1242_s1 + $0x110] sm:$0xff]  ;;  %v653_v22 = vpack.c.bf16 %v53_v20, %v52_v19  ;;  %v85_v23 = vld [vmem:[%s1242_s1 + $0x118] sm:$0xff]  ;;  %v71_v25 = vld [vmem:[%s1242_s1 + $0xa8] sm:$0xff] }
   0x7   :  { %682 = vmatpush3.bf16.msra.mxu1 %v681_v13  ;;  %652 = vmatprep.subr.bf16.mxu0 %v651_v17  ;;  %v685_v26 = vpack.c.bf16 %v85_v23, %v84_v21  ;;  %v655_v27 = vpack.c.bf16 %v71_v25, %v70_v24  ;;  %v102_v28 = vld [vmem:[%s1242_s1 + $0x1a0] sm:$0xff]  ;;  %v103_v29 = vld [vmem:[%s1242_s1 + $0x1a8] sm:$0xff]  ;;  %v72_v36 = vld [vmem:[%s1242_s1 + $0xb0] sm:$0xff] }
   0x8   :  { %684 = vmatprep.subr.bf16.mxu1 %v683_v18  ;;  %v54_v30 = vld [vmem:[%s1242_s1 + $0x20] sm:$0xff]  ;;  %v687_v31 = vpack.c.bf16 %v103_v29, %v102_v28  ;;  %v55_v32 = vld [vmem:[%s1242_s1 + $0x28] sm:$0xff]  ;;  %v73_v37 = vld [vmem:[%s1242_s1 + $0xb8] sm:$0xff] }
   0x9   :  { %v86_v33 = vld [vmem:[%s1242_s1 + $0x120] sm:$0xff]  ;;  %v87_v34 = vld [vmem:[%s1242_s1 + $0x128] sm:$0xff]  ;;  %v657_v35 = vpack.c.bf16 %v55_v32, %v54_v30  ;;  %v104_v38 = vld [vmem:[%s1242_s1 + $0x1b0] sm:$0xff]  ;;  %v659_v40 = vpack.c.bf16 %v73_v37, %v72_v36 }
   0xa   :  { %654 = vmatpush3.bf16.msra.mxu0 %v653_v22  ;;  %v689_v39 = vpack.c.bf16 %v87_v34, %v86_v33  ;;  %v105_v41 = vld [vmem:[%s1242_s1 + $0x1b8] sm:$0xff]  ;;  %v56_v42 = vld [vmem:[%s1242_s1 + $0x30] sm:$0xff]  ;;  %v74_v47 = vld [vmem:[%s1242_s1 + $0xc0] sm:$0xff] }
   0xb   :  { %686 = vmatpush3.bf16.msra.mxu1 %v685_v26  ;;  %656 = vmatprep.subr.bf16.mxu0 %v655_v27  ;;  %v57_v43 = vld [vmem:[%s1242_s1 + $0x38] sm:$0xff]  ;;  %v691_v44 = vpack.c.bf16 %v105_v41, %v104_v38  ;;  %v88_v45 = vld [vmem:[%s1242_s1 + $0x130] sm:$0xff]  ;;  %v75_v48 = vld [vmem:[%s1242_s1 + $0xc8] sm:$0xff] }
   0xc   :  { %688 = vmatprep.subr.bf16.mxu1 %v687_v31  ;;  %v89_v46 = vld [vmem:[%s1242_s1 + $0x138] sm:$0xff]  ;;  %v106_v49 = vld [vmem:[%s1242_s1 + $0x1c0] sm:$0xff]  ;;  %v107_v50 = vld [vmem:[%s1242_s1 + $0x1c8] sm:$0xff]  ;;  %v661_v51 = vpack.c.bf16 %v57_v43, %v56_v42  ;;  %v663_v53 = vpack.c.bf16 %v75_v48, %v74_v47 }
   0xd   :  { %v693_v52 = vpack.c.bf16 %v89_v46, %v88_v45  ;;  %v58_v54 = vld [vmem:[%s1242_s1 + $0x40] sm:$0xff]  ;;  %v59_v55 = vld [vmem:[%s1242_s1 + $0x48] sm:$0xff]  ;;  %v695_v57 = vpack.c.bf16 %v107_v50, %v106_v49  ;;  %v76_v59 = vld [vmem:[%s1242_s1 + $0xd0] sm:$0xff] }
   0xe   :  { %658 = vmatpush3.bf16.msra.mxu0 %v657_v35  ;;  %v90_v56 = vld [vmem:[%s1242_s1 + $0x140] sm:$0xff]  ;;  %v91_v58 = vld [vmem:[%s1242_s1 + $0x148] sm:$0xff]  ;;  %v77_v60 = vld [vmem:[%s1242_s1 + $0xd8] sm:$0xff]  ;;  %v665_v63 = vpack.c.bf16 %v59_v55, %v58_v54 }
   0xf   :  { %690 = vmatpush3.bf16.msra.mxu1 %v689_v39  ;;  %660 = vmatprep.subr.bf16.mxu0 %v659_v40  ;;  %v108_v61 = vld [vmem:[%s1242_s1 + $0x1d0] sm:$0xff]  ;;  %v109_v62 = vld [vmem:[%s1242_s1 + $0x1d8] sm:$0xff]  ;;  %v697_v0 = vpack.c.bf16 %v91_v58, %v90_v56  ;;  %v667_v1 = vpack.c.bf16 %v77_v60, %v76_v59  ;;  %v78_v7 = vld [vmem:[%s1242_s1 + $0xe0] sm:$0xff] }
  0x10   :  { %692 = vmatprep.subr.bf16.mxu1 %v691_v44  ;;  %v60_v2 = vld [vmem:[%s1242_s1 + $0x50] sm:$0xff]  ;;  %v61_v3 = vld [vmem:[%s1242_s1 + $0x58] sm:$0xff]  ;;  %v699_v5 = vpack.c.bf16 %v109_v62, %v108_v61  ;;  %v79_v8 = vld [vmem:[%s1242_s1 + $0xe8] sm:$0xff] }
  0x11   :  { %v92_v4 = vld [vmem:[%s1242_s1 + $0x150] sm:$0xff]  ;;  %v93_v6 = vld [vmem:[%s1242_s1 + $0x158] sm:$0xff]  ;;  %v110_v9 = vld [vmem:[%s1242_s1 + $0x1e0] sm:$0xff]  ;;  %v669_v11 = vpack.c.bf16 %v61_v3, %v60_v2  ;;  %v671_v15 = vpack.c.bf16 %v79_v8, %v78_v7 }
  0x12   :  { %662 = vmatpush3.bf16.msra.mxu0 %v661_v51  ;;  %v111_v10 = vld [vmem:[%s1242_s1 + $0x1e8] sm:$0xff]  ;;  %v62_v12 = vld [vmem:[%s1242_s1 + $0x60] sm:$0xff]  ;;  %v701_v14 = vpack.c.bf16 %v93_v6, %v92_v4  ;;  %v37_v18 = vld [vmem:[%s1243_s0 + $0x18] sm:$0xff] }
  0x13   :  { %694 = vmatpush3.bf16.msra.mxu1 %v693_v52  ;;  %664 = vmatprep.subr.bf16.mxu0 %v663_v53  ;;  %v63_v13 = vld [vmem:[%s1242_s1 + $0x68] sm:$0xff]  ;;  %v94_v16 = vld [vmem:[%s1242_s1 + $0x160] sm:$0xff]  ;;  %v703_v19 = vpack.c.bf16 %v111_v10, %v110_v9  ;;  %v80_v21 = vld [vmem:[%s1242_s1 + $0xf0] sm:$0xff] }
  0x14   :  { %696 = vmatprep.subr.bf16.mxu1 %v695_v57  ;;  %v35_v17 = vld [vmem:[%s1243_s0 + $0x8] sm:$0xff]  ;;  %v81_v22 = vld [vmem:[%s1242_s1 + $0xf8] sm:$0xff]  ;;  %v112_v23 = vld [vmem:[%s1242_s1 + $0x1f0] sm:$0xff]  ;;  %317 = vmatprep.mubr.f32.mxu1 %v37_v18  ;;  %v673_v25 = vpack.c.bf16 %v63_v13, %v62_v12 }
  0x15   :  { %v95_v20 = vld [vmem:[%s1242_s1 + $0x168] sm:$0xff]  ;;  %242 = vmatprep.mubr.f32.mxu0 %v35_v17  ;;  %v113_v24 = vld [vmem:[%s1242_s1 + $0x1f8] sm:$0xff]  ;;  %v675_v27 = vpack.c.bf16 %v81_v22, %v80_v21  ;;  %v64_v28 = vld [vmem:[%s1242_s1 + $0x70] sm:$0xff] }
  0x16   :  { %666 = vmatpush3.bf16.msra.mxu0 %v665_v63  ;;  %v705_v26 = vpack.c.bf16 %v95_v20, %v94_v16  ;;  %v65_v29 = vld [vmem:[%s1242_s1 + $0x78] sm:$0xff]  ;;  %v96_v30 = vld [vmem:[%s1242_s1 + $0x170] sm:$0xff]  ;;  %v707_v31 = vpack.c.bf16 %v113_v24, %v112_v23  ;;  %v130_v33 = vld [vmem:[%s1242_s1 + $0x280] sm:$0xff] }
  0x17   :  { %698 = vmatpush3.bf16.msra.mxu1 %v697_v0  ;;  %668 = vmatprep.subr.bf16.mxu0 %v667_v1  ;;  %v97_v32 = vld [vmem:[%s1242_s1 + $0x178] sm:$0xff]  ;;  %v131_v34 = vld [vmem:[%s1242_s1 + $0x288] sm:$0xff]  ;;  %v162_v35 = vld [vmem:[%s1242_s1 + $0x380] sm:$0xff]  ;;  %v677_v37 = vpack.c.bf16 %v65_v29, %v64_v28 }
  0x18   :  { %700 = vmatprep.subr.bf16.mxu1 %v699_v5  ;;  %v163_v36 = vld [vmem:[%s1242_s1 + $0x388] sm:$0xff]  ;;  %v709_v38 = vpack.c.bf16 %v97_v32, %v96_v30  ;;  %v711_v39 = vpack.c.bf16 %v131_v34, %v130_v33  ;;  %v114_v40 = vld [vmem:[%s1242_s1 + $0x200] sm:$0xff]  ;;  %v132_v45 = vld [vmem:[%s1242_s1 + $0x290] sm:$0xff] }
  0x19   :  { %v115_v41 = vld [vmem:[%s1242_s1 + $0x208] sm:$0xff]  ;;  %v146_v42 = vld [vmem:[%s1242_s1 + $0x300] sm:$0xff]  ;;  %v743_v43 = vpack.c.bf16 %v163_v36, %v162_v35  ;;  %v133_v46 = vld [vmem:[%s1242_s1 + $0x298] sm:$0xff] }
  0x1a   :  { %670 = vmatpush3.bf16.msra.mxu0 %v669_v11  ;;  %v147_v44 = vld [vmem:[%s1242_s1 + $0x308] sm:$0xff]  ;;  %v164_v47 = vld [vmem:[%s1242_s1 + $0x390] sm:$0xff]  ;;  %v165_v48 = vld [vmem:[%s1242_s1 + $0x398] sm:$0xff]  ;;  %v713_v51 = vpack.c.bf16 %v115_v41, %v114_v40  ;;  %v715_v53 = vpack.c.bf16 %v133_v46, %v132_v45 }
  0x1b   :  { %702 = vmatpush3.bf16.msra.mxu1 %v701_v14  ;;  %672 = vmatprep.subr.bf16.mxu0 %v671_v15  ;;  %v34_v49 = vld [vmem:[%s1243_s0] sm:$0xff]  ;;  %v36_v50 = vld [vmem:[%s1243_s0 + $0x10] sm:$0xff]  ;;  %v745_v52 = vpack.c.bf16 %v147_v44, %v146_v42  ;;  %v117_v55 = vld [vmem:[%s1242_s1 + $0x218] sm:$0xff]  ;;  %v747_v57 = vpack.c.bf16 %v165_v48, %v164_v47 }
  0x1c   :  { %704 = vmatprep.subr.bf16.mxu1 %v703_v19  ;;  %v116_v54 = vld [vmem:[%s1242_s1 + $0x210] sm:$0xff]  ;;  %v149_v58 = vld [vmem:[%s1242_s1 + $0x318] sm:$0xff]  ;;  %v134_v59 = vld [vmem:[%s1242_s1 + $0x2a0] sm:$0xff] }
  0x1d   :  { %v148_v56 = vld [vmem:[%s1242_s1 + $0x310] sm:$0xff]  ;;  %v135_v60 = vld [vmem:[%s1242_s1 + $0x2a8] sm:$0xff]  ;;  %v166_v61 = vld [vmem:[%s1242_s1 + $0x3a0] sm:$0xff]  ;;  %v717_v63 = vpack.c.bf16 %v117_v55, %v116_v54 }
  0x1e   :  { %674 = vmatpush3.bf16.msra.mxu0 %v673_v25  ;;  %v167_v62 = vld [vmem:[%s1242_s1 + $0x3a8] sm:$0xff]  ;;  %v749_v0 = vpack.c.bf16 %v149_v58, %v148_v56  ;;  %v719_v1 = vpack.c.bf16 %v135_v60, %v134_v59  ;;  %v118_v2 = vld [vmem:[%s1242_s1 + $0x220] sm:$0xff]  ;;  %v136_v7 = vld [vmem:[%s1242_s1 + $0x2b0] sm:$0xff] }
  0x1f   :  { %706 = vmatpush3.bf16.msra.mxu1 %v705_v26  ;;  %676 = vmatprep.subr.bf16.mxu0 %v675_v27  ;;  %v119_v3 = vld [vmem:[%s1242_s1 + $0x228] sm:$0xff]  ;;  %v150_v4 = vld [vmem:[%s1242_s1 + $0x320] sm:$0xff]  ;;  %v751_v5 = vpack.c.bf16 %v167_v62, %v166_v61  ;;  %v137_v8 = vld [vmem:[%s1242_s1 + $0x2b8] sm:$0xff] }
  0x20   :  { %708 = vmatprep.subr.bf16.mxu1 %v707_v31  ;;  %v151_v6 = vld [vmem:[%s1242_s1 + $0x328] sm:$0xff]  ;;  %v120_v9 = vld [vmem:[%s1242_s1 + $0x230] sm:$0xff]  ;;  %v169_v11 = vld [vmem:[%s1242_s1 + $0x3b8] sm:$0xff]  ;;  %v721_v12 = vpack.c.bf16 %v119_v3, %v118_v2  ;;  %v723_v17 = vpack.c.bf16 %v137_v8, %v136_v7 }
  0x21   :  { %v168_v10 = vld [vmem:[%s1242_s1 + $0x3b0] sm:$0xff]  ;;  %v121_v13 = vld [vmem:[%s1242_s1 + $0x238] sm:$0xff]  ;;  %v43_v15 = vld [vmem:[%s1243_s0 + $0x48] sm:$0xff]  ;;  %v753_v16 = vpack.c.bf16 %v151_v6, %v150_v4 }
  0x22   :  { %678 = vmatpush3.bf16.msra.mxu0 %v677_v37  ;;  %v152_v14 = vld [vmem:[%s1242_s1 + $0x330] sm:$0xff]  ;;  %v153_v18 = vld [vmem:[%s1242_s1 + $0x338] sm:$0xff]  ;;  %v138_v19 = vld [vmem:[%s1242_s1 + $0x2c0] sm:$0xff]  ;;  %v755_v21 = vpack.c.bf16 %v169_v11, %v168_v10  ;;  %v725_v27 = vpack.c.bf16 %v121_v13, %v120_v9 }
  0x23   :  { %710 = vmatpush3.bf16.msra.mxu1 %v709_v38  ;;  %712 = vmatprep.subr.bf16.mxu0 %v711_v39  ;;  %v45_v20 = vld [vmem:[%s1243_s0 + $0x58] sm:$0xff]  ;;  %v139_v22 = vld [vmem:[%s1242_s1 + $0x2c8] sm:$0xff]  ;;  %v42_v23 = vld [vmem:[%s1243_s0 + $0x40] sm:$0xff]  ;;  %v757_v30 = vpack.c.bf16 %v153_v18, %v152_v14 }
  0x24   :  { %744 = vmatprep.subr.bf16.mxu1 %v743_v43  ;;  %v44_v24 = vld [vmem:[%s1243_s0 + $0x50] sm:$0xff]  ;;  %v170_v25 = vld [vmem:[%s1242_s1 + $0x3c0] sm:$0xff]  ;;  %v171_v26 = vld [vmem:[%s1242_s1 + $0x3c8] sm:$0xff]  ;;  %v727_v31 = vpack.c.bf16 %v139_v22, %v138_v19 }
  0x25   :  { %243 = vmatmul.mubr.f32.vlgmr.msra.gmra.mrb[0].mxu0 %v34_v49  ;;  %v122_v28 = vld [vmem:[%s1242_s1 + $0x240] sm:$0xff]  ;;  %v123_v29 = vld [vmem:[%s1242_s1 + $0x248] sm:$0xff]  ;;  %v759_v35 = vpack.c.bf16 %v171_v26, %v170_v25  ;;  %v140_v36 = vld [vmem:[%s1242_s1 + $0x2d0] sm:$0xff] }
  0x26   :  { %318 = vmatmul.mubr.f32.vlgmr.msra.gmra.mrb[0].mxu1 %v36_v50  ;;  %714 = vmatpush3.bf16.msra.mxu0 %v713_v51  ;;  %v154_v32 = vld [vmem:[%s1242_s1 + $0x340] sm:$0xff]  ;;  %v155_v33 = vld [vmem:[%s1242_s1 + $0x348] sm:$0xff]  ;;  %v141_v37 = vld [vmem:[%s1242_s1 + $0x2d8] sm:$0xff]  ;;  %v729_v41 = vpack.c.bf16 %v123_v29, %v122_v28 }
  0x27   :  { %746 = vmatpush3.bf16.msra.mxu1 %v745_v52  ;;  %716 = vmatprep.subr.bf16.mxu0 %v715_v53  ;;  %v39_v34 = vld [vmem:[%s1243_s0 + $0x28] sm:$0xff]  ;;  %v41_v38 = vld [vmem:[%s1243_s0 + $0x38] sm:$0xff]  ;;  %v172_v39 = vld [vmem:[%s1242_s1 + $0x3d0] sm:$0xff]  ;;  %v761_v43 = vpack.c.bf16 %v155_v33, %v154_v32  ;;  %v731_v44 = vpack.c.bf16 %v141_v37, %v140_v36 }
  0x28   :  { %748 = vmatprep.subr.bf16.mxu1 %v747_v57  ;;  %247 = vmatprep.mubr.f32.mxu0 %v43_v15  ;;  %v173_v40 = vld [vmem:[%s1242_s1 + $0x3d8] sm:$0xff]  ;;  %v18_v42 = vld [vmem:[%s1244_s2] sm:$0xff]  ;;  %v124_v45 = vld [vmem:[%s1242_s1 + $0x250] sm:$0xff] }
  0x29   :  { %322 = vmatprep.mubr.f32.mxu1 %v45_v20  ;;  %248 = vmatmul.mubr.f32.gmra.mrb[2].mxu0 %v42_v23  ;;  %v125_v46 = vld [vmem:[%s1242_s1 + $0x258] sm:$0xff]  ;;  %v156_v47 = vld [vmem:[%s1242_s1 + $0x350] sm:$0xff]  ;;  %v763_v48 = vpack.c.bf16 %v173_v40, %v172_v39  ;;  %v142_v50 = vld [vmem:[%s1242_s1 + $0x2e0] sm:$0xff] }
  0x2a   :  { %718 = vmatpush3.bf16.msra.mxu0 %v717_v63  ;;  %323 = vmatmul.mubr.f32.gmra.mrb[2].mxu1 %v44_v24  ;;  %v157_v49 = vld [vmem:[%s1242_s1 + $0x358] sm:$0xff]  ;;  %v143_v51 = vld [vmem:[%s1242_s1 + $0x2e8] sm:$0xff]  ;;  %v174_v52 = vld [vmem:[%s1242_s1 + $0x3e0] sm:$0xff]  ;;  %v733_v55 = vpack.c.bf16 %v125_v46, %v124_v45 }
  0x2b   :  { %750 = vmatpush3.bf16.msra.mxu1 %v749_v0  ;;  %720 = vmatprep.subr.bf16.mxu0 %v719_v1  ;;  %v175_v53 = vld [vmem:[%s1242_s1 + $0x3e8] sm:$0xff]  ;;  %v765_v56 = vpack.c.bf16 %v157_v49, %v156_v47  ;;  %v735_v57 = vpack.c.bf16 %v143_v51, %v142_v50  ;;  %v126_v58 = vld [vmem:[%s1242_s1 + $0x260] sm:$0xff]  ;;  %v144_v63 = vld [vmem:[%s1242_s1 + $0x2f0] sm:$0xff] }
  0x2c   :  { %752 = vmatprep.subr.bf16.mxu1 %v751_v5  ;;  %392 = vmatprep.mubr.f32.mxu0 %v39_v34  ;;  %v19_v54 = vld [vmem:[%s1244_s2 + $0x8] sm:$0xff]  ;;  %v158_v60 = vld [vmem:[%s1242_s1 + $0x360] sm:$0xff]  ;;  %v767_v61 = vpack.c.bf16 %v175_v53, %v174_v52  ;;  %v145_v0 = vld [vmem:[%s1242_s1 + $0x2f8] sm:$0xff] }
  0x2d   :  { %467 = vmatprep.mubr.f32.mxu1 %v41_v38  ;;  %22 = vperm.xlu0 %776, %v18_v42   ;;  %v127_v59 = vld [vmem:[%s1242_s1 + $0x268] sm:$0xff]  ;;  %v176_v1 = vld [vmem:[%s1242_s1 + $0x3f0] sm:$0xff]  ;;  %v177_v2 = vld [vmem:[%s1242_s1 + $0x3f8] sm:$0xff]  ;;  %v739_v5 = vpack.c.bf16 %v145_v0, %v144_v63 }
  0x2e   :  { %722 = vmatpush3.bf16.msra.mxu0 %v721_v12  ;;  %v159_v62 = vld [vmem:[%s1242_s1 + $0x368] sm:$0xff]  ;;  %v737_v3 = vpack.c.bf16 %v127_v59, %v126_v58  ;;  %v128_v6 = vld [vmem:[%s1242_s1 + $0x270] sm:$0xff]  ;;  %v129_v7 = vld [vmem:[%s1242_s1 + $0x278] sm:$0xff]  ;;  %v771_v8 = vpack.c.bf16 %v177_v2, %v176_v1 }
  0x2f   :  { %754 = vmatpush3.bf16.msra.mxu1 %v753_v16  ;;  %724 = vmatprep.subr.bf16.mxu0 %v723_v17  ;;  %v769_v4 = vpack.c.bf16 %v159_v62, %v158_v60  ;;  %v160_v9 = vld [vmem:[%s1242_s1 + $0x370] sm:$0xff]  ;;  %v161_v10 = vld [vmem:[%s1242_s1 + $0x378] sm:$0xff]  ;;  %v741_v11 = vpack.c.bf16 %v129_v7, %v128_v6  ;;  %v38_v13 = vld [vmem:[%s1243_s0 + $0x20] sm:$0xff] }
  0x30   :  { %756 = vmatprep.subr.bf16.mxu1 %v755_v21  ;;  %v773_v12 = vpack.c.bf16 %v161_v10, %v160_v9  ;;  %v40_v14 = vld [vmem:[%s1243_s0 + $0x30] sm:$0xff]  ;;  %v47_v15 = vld [vmem:[%s1243_s0 + $0x68] sm:$0xff]  ;;  %v49_v16 = vld [vmem:[%s1243_s0 + $0x78] sm:$0xff] }
  0x31   :  { %27 = vperm.xlu0 %776, %v19_v54   ;;  %v46_v17 = vld [vmem:[%s1243_s0 + $0x60] sm:$0xff]  ;;  %v48_v18 = vld [vmem:[%s1243_s0 + $0x70] sm:$0xff] }
  0x32   :  { %726 = vmatpush3.bf16.msra.mxu0 %v725_v27 }
  0x33   :  { %758 = vmatpush3.bf16.msra.mxu1 %v757_v30  ;;  %728 = vmatprep.subr.bf16.mxu0 %v727_v31 }
  0x34   :  { %760 = vmatprep.subr.bf16.mxu1 %v759_v35 }
  0x36   :  { %730 = vmatpush3.bf16.msra.mxu0 %v729_v41 }
  0x37   :  { %762 = vmatpush3.bf16.msra.mxu1 %v761_v43  ;;  %732 = vmatprep.subr.bf16.mxu0 %v731_v44 }
  0x38   :  { %764 = vmatprep.subr.bf16.mxu1 %v763_v48 }
  0x3a   :  { %734 = vmatpush3.bf16.msra.mxu0 %v733_v55 }
  0x3b   :  { %766 = vmatpush3.bf16.msra.mxu1 %v765_v56  ;;  %736 = vmatprep.subr.bf16.mxu0 %v735_v57 }
  0x3c   :  { %768 = vmatprep.subr.bf16.mxu1 %v767_v61 }
  0x3e   :  { %738 = vmatpush3.bf16.msra.mxu0 %v737_v3 }
  0x3f   :  { %770 = vmatpush3.bf16.msra.mxu1 %v769_v4  ;;  %740 = vmatprep.subr.bf16.mxu0 %v739_v5 }
  0x40   :  { %772 = vmatprep.subr.bf16.mxu1 %v771_v8 }
  0x42   :  { %742 = vmatpush3.bf16.msra.mxu0 %v741_v11 }
  0x43   :  { %774 = vmatpush3.bf16.msra.mxu1 %v773_v12 }
  0x45   :  { %393 = vmatmul.mubr.f32.vlgmr.msra.gmra.mrb[4].mxu0 %v38_v13 }
  0x46   :  { %468 = vmatmul.mubr.f32.vlgmr.msra.gmra.mrb[4].mxu1 %v40_v14  ;;  %397 = vmatprep.mubr.f32.mxu0 %v47_v15 }
  0x47   :  { %472 = vmatprep.mubr.f32.mxu1 %v49_v16 }
  0x49   :  { %398 = vmatmul.mubr.f32.gmra.mrb[6].mxu0 %v46_v17 }
  0x4a   :  { %473 = vmatmul.mubr.f32.gmra.mrb[6].mxu1 %v48_v18 }
  0xac   :  { %v23_v40 = vpop.permute.xlu0 %22 }
  0xb0   :  { %v28_v52 = vpop.permute.xlu0 %27 }
  0xf8   :  { %v527_v19 = vpop.f32.mrb[0].mxu0 }
  0xf9   :  { %v565_v20 = vpop.f32.mrb[0].mxu1  ;;  %v528_v21 = vpop.f32.mrb[1].mxu0 }
  0xfa   :  { %v529_v22 = vadd.f32 %v528_v21, %v527_v19  ;;  %v566_v23 = vpop.f32.mrb[1].mxu1 }
  0xfb   :  { %v567_v24 = vadd.f32 %v566_v23, %v565_v20 }
  0xfc   :  { %v530_v26 = vpop.f32.mrb[2].mxu0 }
  0xfd   :  { %v320_v25 = vadd.f32 %v567_v24, %v529_v22  ;;  %v568_v27 = vpop.f32.mrb[2].mxu1  ;;  %v531_v28 = vpop.f32.mrb[3].mxu0 }
  0xfe   :  { %v532_v29 = vadd.f32 %v531_v28, %v530_v26  ;;  %v569_v30 = vpop.f32.mrb[3].mxu1 }
  0xff   :  { %v570_v31 = vadd.f32 %v569_v30, %v568_v27 }
 0x101   :  { %v325_v32 = vadd.f32 %v570_v31, %v532_v29 }
 0x118   :  { %v603_v33 = vpop.f32.mrb[4].mxu0 }
 0x119   :  { %v604_v34 = vpop.f32.mrb[5].mxu0  ;;  %v641_v35 = vpop.f32.mrb[4].mxu1 }
 0x11a   :  { %v605_v36 = vadd.f32 %v604_v34, %v603_v33  ;;  %v642_v37 = vpop.f32.mrb[5].mxu1 }
 0x11b   :  { %v643_v38 = vadd.f32 %v642_v37, %v641_v35 }
 0x11c   :  { %v395_v39 = vadd.f32 %v605_v36, %v320_v25  ;;  %v606_v41 = vpop.f32.mrb[6].mxu0 }
 0x11d   :  { %v607_v42 = vpop.f32.mrb[7].mxu0  ;;  %v644_v43 = vpop.f32.mrb[6].mxu1 }
 0x11e   :  { %v470_v44 = vadd.f32 %v643_v38, %v395_v39  ;;  %v608_v45 = vadd.f32 %v607_v42, %v606_v41  ;;  %v645_v46 = vpop.f32.mrb[7].mxu1 }
 0x11f   :  { %v646_v47 = vadd.f32 %v645_v46, %v644_v43 }
 0x120   :  { %v478_v48 = vadd.f32 %v470_v44, %v23_v40  ;;  %v400_v49 = vadd.f32 %v608_v45, %v325_v32 }
 0x122   :  { %v487_v50 = vmax.f32 %v478_v48, 0.0  ;;  %v475_v51 = vadd.f32 %v646_v47, %v400_v49 }
 0x124   :  { %489 = vst [vmem:[%s1245_s3] sm:$0xff] %v487_v50  ;;  %v479_v53 = vadd.f32 %v475_v51, %v28_v52 }
 0x126   :  { %v488_v54 = vmax.f32 %v479_v53, 0.0 }
 0x128   :  { %490 = vst [vmem:[%s1245_s3 + $0x8] sm:$0xff] %v488_v54 }

// kernel: forward.5
= control target key start
LH: loop header
LB: loop body
LE: loop exit
PB: predicated region body
PF: predicated region fallthrough
CT: control target
= control target key end

     0   :  { %v376_v0 = vmov 0.0|0.0   ;;  %v377_v4 = vmov 0   ;;  %vm96_vm0 = vcmask 392192   ;;  %s609_s1 = inlined_call_operand.vmem [shape: f32[432,128], index: 1, kind: input, shape index: {}]   ;;  %s610_s0 = inlined_call_operand.vmem [shape: f32[16,432], index: 0, kind: input, shape index: {}]   ;;  %s611_s2 = inlined_call_operand.vmem [shape: f32[16,1], index: 2, kind: input, shape index: {}]   ;;  %s612_s3 = inlined_call_operand.vmem [shape: f32[16,128], index: 3, kind: output, shape index: {}]  }
   0x1   :  { %340 = vmatprep.subr.bf16.mxu1 %v376_v0  ;;  %v74_v1 = vld [vmem:[%s609_s1 + $0x100] sm:$0xff]  ;;  %v75_v2 = vld [vmem:[%s609_s1 + $0x108] sm:$0xff]  ;;  %v76_v3 = vld [vmem:[%s609_s1 + $0x110] sm:$0xff]  ;;  %375 = vset.pattern.permute.xlu0 %v377_v4 }
   0x2   :  { %v341_v5 = vpack.c.bf16 %v75_v2, %v74_v1  ;;  %v77_v6 = vld [vmem:[%s609_s1 + $0x118] sm:$0xff]  ;;  %v58_v7 = vld [vmem:[%s609_s1 + $0x80] sm:$0xff]  ;;  %v59_v8 = vld [vmem:[%s609_s1 + $0x88] sm:$0xff] }
   0x3   :  { %v308_v9 = vpack.c.bf16 %v59_v8, %v58_v7  ;;  %v42_v10 = vld [vmem:[%s609_s1] sm:$0xff]  ;;  %v43_v11 = vld [vmem:[%s609_s1 + $0x8] sm:$0xff]  ;;  %v344_v12 = vpack.c.bf16 %v77_v6, %v76_v3  ;;  %v60_v15 = vld [vmem:[%s609_s1 + $0x90] sm:$0xff] }
   0x4   :  { %342 = vmatpush1.bf16.msra.mxu1 %v341_v5  ;;  %v310_v13 = vpack.c.bf16 %v43_v11, %v42_v10  ;;  %v78_v14 = vld [vmem:[%s609_s1 + $0x120] sm:$0xff]  ;;  %v61_v16 = vld [vmem:[%s609_s1 + $0x98] sm:$0xff]  ;;  %v79_v17 = vld [vmem:[%s609_s1 + $0x128] sm:$0xff] }
   0x5   :  { %343 = vmatprep.subr.bf16.mxu1 %v376_v0  ;;  %309 = vmatprep.subr.bf16.mxu0 %v308_v9  ;;  %v312_v18 = vpack.c.bf16 %v61_v16, %v60_v15  ;;  %v44_v19 = vld [vmem:[%s609_s1 + $0x10] sm:$0xff]  ;;  %v45_v20 = vld [vmem:[%s609_s1 + $0x18] sm:$0xff]  ;;  %v62_v22 = vld [vmem:[%s609_s1 + $0xa0] sm:$0xff]  ;;  %v347_v27 = vpack.c.bf16 %v79_v17, %v78_v14 }
   0x6   :  { %311 = vmatpush3.bf16.msra.mxu0 %v310_v13  ;;  %v314_v21 = vpack.c.bf16 %v45_v20, %v44_v19  ;;  %v63_v23 = vld [vmem:[%s609_s1 + $0xa8] sm:$0xff]  ;;  %v46_v25 = vld [vmem:[%s609_s1 + $0x20] sm:$0xff]  ;;  %v64_v28 = vld [vmem:[%s609_s1 + $0xb0] sm:$0xff] }
   0x7   :  { %313 = vmatprep.subr.bf16.mxu0 %v312_v18  ;;  %v316_v24 = vpack.c.bf16 %v63_v23, %v62_v22  ;;  %v47_v26 = vld [vmem:[%s609_s1 + $0x28] sm:$0xff]  ;;  %v65_v29 = vld [vmem:[%s609_s1 + $0xb8] sm:$0xff]  ;;  %v80_v30 = vld [vmem:[%s609_s1 + $0x130] sm:$0xff] }
   0x8   :  { %345 = vmatpush1.bf16.msra.mxu1 %v344_v12  ;;  %v81_v31 = vld [vmem:[%s609_s1 + $0x138] sm:$0xff]  ;;  %v318_v32 = vpack.c.bf16 %v47_v26, %v46_v25  ;;  %v320_v33 = vpack.c.bf16 %v65_v29, %v64_v28  ;;  %v48_v34 = vld [vmem:[%s609_s1 + $0x30] sm:$0xff]  ;;  %v66_v37 = vld [vmem:[%s609_s1 + $0xc0] sm:$0xff] }
   0x9   :  { %346 = vmatprep.subr.bf16.mxu1 %v376_v0  ;;  %v49_v35 = vld [vmem:[%s609_s1 + $0x38] sm:$0xff]  ;;  %v350_v36 = vpack.c.bf16 %v81_v31, %v80_v30  ;;  %v67_v38 = vld [vmem:[%s609_s1 + $0xc8] sm:$0xff]  ;;  %v82_v39 = vld [vmem:[%s609_s1 + $0x140] sm:$0xff] }
   0xa   :  { %315 = vmatpush3.bf16.msra.mxu0 %v314_v21  ;;  %v83_v40 = vld [vmem:[%s609_s1 + $0x148] sm:$0xff]  ;;  %v322_v41 = vpack.c.bf16 %v49_v35, %v48_v34  ;;  %v324_v42 = vpack.c.bf16 %v67_v38, %v66_v37  ;;  %v50_v43 = vld [vmem:[%s609_s1 + $0x40] sm:$0xff]  ;;  %v68_v46 = vld [vmem:[%s609_s1 + $0xd0] sm:$0xff] }
   0xb   :  { %317 = vmatprep.subr.bf16.mxu0 %v316_v24  ;;  %v51_v44 = vld [vmem:[%s609_s1 + $0x48] sm:$0xff]  ;;  %v353_v45 = vpack.c.bf16 %v83_v40, %v82_v39  ;;  %v69_v47 = vld [vmem:[%s609_s1 + $0xd8] sm:$0xff]  ;;  %v84_v48 = vld [vmem:[%s609_s1 + $0x150] sm:$0xff] }
   0xc   :  { %348 = vmatpush1.bf16.msra.mxu1 %v347_v27  ;;  %v85_v49 = vld [vmem:[%s609_s1 + $0x158] sm:$0xff]  ;;  %v326_v50 = vpack.c.bf16 %v51_v44, %v50_v43  ;;  %v35_v51 = vld [vmem:[%s610_s0 + $0x8] sm:$0xff]  ;;  %v328_v52 = vpack.c.bf16 %v69_v47, %v68_v46  ;;  %v52_v53 = vld [vmem:[%s609_s1 + $0x50] sm:$0xff] }
   0xd   :  { %349 = vmatprep.subr.bf16.mxu1 %v376_v0  ;;  %v53_v54 = vld [vmem:[%s609_s1 + $0x58] sm:$0xff]  ;;  %167 = vmatprep.mubr.f32.mxu0 %v35_v51  ;;  %v356_v55 = vpack.c.bf16 %v85_v49, %v84_v48  ;;  %v70_v56 = vld [vmem:[%s609_s1 + $0xe0] sm:$0xff]  ;;  %v71_v57 = vld [vmem:[%s609_s1 + $0xe8] sm:$0xff] }
   0xe   :  { %319 = vmatpush3.bf16.msra.mxu0 %v318_v32  ;;  %v37_v58 = vld [vmem:[%s610_s0 + $0x18] sm:$0xff]  ;;  %v86_v59 = vld [vmem:[%s609_s1 + $0x160] sm:$0xff]  ;;  %v87_v60 = vld [vmem:[%s609_s1 + $0x168] sm:$0xff]  ;;  %v330_v62 = vpack.c.bf16 %v53_v54, %v52_v53  ;;  %v332_v63 = vpack.c.bf16 %v71_v57, %v70_v56 }
   0xf   :  { %321 = vmatprep.subr.bf16.mxu0 %v320_v33  ;;  %268 = vmatprep.mubr.msk.f32.mxu1 %vm96_vm0, %v37_v58  ;;  %v18_v61 = vld [vmem:[%s611_s2] sm:$0xff]  ;;  %v55_v2 = vld [vmem:[%s609_s1 + $0x68] sm:$0xff]  ;;  %v359_v4 = vpack.c.bf16 %v87_v60, %v86_v59  ;;  %v72_v5 = vld [vmem:[%s609_s1 + $0xf0] sm:$0xff] }
  0x10   :  { %351 = vmatpush1.bf16.msra.mxu1 %v350_v36  ;;  %22 = vperm.xlu0 %375, %v18_v61   ;;  %v54_v1 = vld [vmem:[%s609_s1 + $0x60] sm:$0xff]  ;;  %v19_v3 = vld [vmem:[%s611_s2 + $0x8] sm:$0xff]  ;;  %v73_v6 = vld [vmem:[%s609_s1 + $0xf8] sm:$0xff] }
  0x11   :  { %352 = vmatprep.subr.bf16.mxu1 %v376_v0  ;;  %v88_v7 = vld [vmem:[%s609_s1 + $0x170] sm:$0xff]  ;;  %v89_v8 = vld [vmem:[%s609_s1 + $0x178] sm:$0xff]  ;;  %v334_v9 = vpack.c.bf16 %v55_v2, %v54_v1  ;;  %v336_v10 = vpack.c.bf16 %v73_v6, %v72_v5  ;;  %v90_v14 = vld [vmem:[%s609_s1 + $0x180] sm:$0xff] }
  0x12   :  { %323 = vmatpush3.bf16.msra.mxu0 %v322_v41  ;;  %v56_v11 = vld [vmem:[%s609_s1 + $0x70] sm:$0xff]  ;;  %v57_v12 = vld [vmem:[%s609_s1 + $0x78] sm:$0xff]  ;;  %v362_v13 = vpack.c.bf16 %v89_v8, %v88_v7  ;;  %v91_v15 = vld [vmem:[%s609_s1 + $0x188] sm:$0xff] }
  0x13   :  { %325 = vmatprep.subr.bf16.mxu0 %v324_v42  ;;  %v338_v16 = vpack.c.bf16 %v57_v12, %v56_v11  ;;  %v365_v17 = vpack.c.bf16 %v91_v15, %v90_v14  ;;  %v92_v18 = vld [vmem:[%s609_s1 + $0x190] sm:$0xff]  ;;  %v93_v19 = vld [vmem:[%s609_s1 + $0x198] sm:$0xff]  ;;  %v34_v20 = vld [vmem:[%s610_s0] sm:$0xff] }
  0x14   :  { %354 = vmatpush1.bf16.msra.mxu1 %v353_v45  ;;  %27 = vperm.xlu0 %375, %v19_v3   ;;  %v39_v21 = vld [vmem:[%s610_s0 + $0x28] sm:$0xff]  ;;  %v368_v22 = vpack.c.bf16 %v93_v19, %v92_v18  ;;  %v94_v23 = vld [vmem:[%s609_s1 + $0x1a0] sm:$0xff]  ;;  %v36_v27 = vld [vmem:[%s610_s0 + $0x10] sm:$0xff] }
  0x15   :  { %355 = vmatprep.subr.bf16.mxu1 %v376_v0  ;;  %v95_v24 = vld [vmem:[%s609_s1 + $0x1a8] sm:$0xff]  ;;  %v38_v25 = vld [vmem:[%s610_s0 + $0x20] sm:$0xff]  ;;  %v41_v28 = vld [vmem:[%s610_s0 + $0x38] sm:$0xff] }
  0x16   :  { %327 = vmatpush3.bf16.msra.mxu0 %v326_v50  ;;  %v371_v26 = vpack.c.bf16 %v95_v24, %v94_v23  ;;  %v40_v29 = vld [vmem:[%s610_s0 + $0x30] sm:$0xff] }
  0x17   :  { %329 = vmatprep.subr.bf16.mxu0 %v328_v52 }
  0x18   :  { %357 = vmatpush1.bf16.msra.mxu1 %v356_v55 }
  0x19   :  { %358 = vmatprep.subr.bf16.mxu1 %v376_v0 }
  0x1a   :  { %331 = vmatpush3.bf16.msra.mxu0 %v330_v62 }
  0x1b   :  { %333 = vmatprep.subr.bf16.mxu0 %v332_v63 }
  0x1c   :  { %360 = vmatpush1.bf16.msra.mxu1 %v359_v4 }
  0x1d   :  { %361 = vmatprep.subr.bf16.mxu1 %v376_v0 }
  0x1e   :  { %335 = vmatpush3.bf16.msra.mxu0 %v334_v9 }
  0x1f   :  { %337 = vmatprep.subr.bf16.mxu0 %v336_v10 }
  0x20   :  { %363 = vmatpush1.bf16.msra.mxu1 %v362_v13 }
  0x21   :  { %364 = vmatprep.subr.bf16.mxu1 %v376_v0 }
  0x22   :  { %339 = vmatpush3.bf16.msra.mxu0 %v338_v16 }
  0x24   :  { %366 = vmatpush1.bf16.msra.mxu1 %v365_v17 }
  0x25   :  { %367 = vmatprep.subr.bf16.mxu1 %v376_v0  ;;  %168 = vmatmul.mubr.f32.vlgmr.msra.gmra.mrb[0].mxu0 %v34_v20 }
  0x26   :  { %172 = vmatprep.mubr.f32.mxu0 %v39_v21 }
  0x28   :  { %369 = vmatpush1.bf16.msra.mxu1 %v368_v22 }
  0x29   :  { %370 = vmatprep.subr.bf16.mxu1 %v376_v0  ;;  %173 = vmatmul.mubr.f32.gmra.mrb[2].mxu0 %v38_v25 }
  0x2c   :  { %372 = vmatpush1.bf16.msra.mxu1 %v371_v26 }
  0x2f   :  { %243 = vmatmul.mubr.f32.vlgmr.msra.gmra.mrb[0].mxu1 %v36_v27 }
  0x30   :  { %269 = vmatprep.mubr.msk.f32.mxu1 %vm96_vm0, %v41_v28 }
  0x33   :  { %248 = vmatmul.mubr.f32.gmra.mrb[2].mxu1 %v40_v29 }
  0x8f   :  { %v23_v35 = vpop.permute.xlu0 %22 }
  0x93   :  { %v28_v43 = vpop.permute.xlu0 %27 }
  0xf8   :  { %v302_v30 = vpop.f32.mrb[0].mxu0 }
  0xf9   :  { %v303_v0 = vpop.f32.mrb[1].mxu0 }
  0xfa   :  { %v304_v31 = vadd.f32 %v303_v0, %v302_v30 }
  0xfc   :  { %v305_v32 = vpop.f32.mrb[2].mxu0 }
  0xfd   :  { %v306_v33 = vpop.f32.mrb[3].mxu0 }
  0xfe   :  { %v307_v34 = vadd.f32 %v306_v33, %v305_v32 }
 0x102   :  { %v244_v36 = vpop.f32.mrb[0].mxu1 }
 0x103   :  { %v245_v37 = vadd.f32 %v304_v31, %v244_v36  ;;  %v246_v38 = vpop.f32.mrb[1].mxu1 }
 0x105   :  { %v253_v39 = vadd.f32 %v245_v37, %v23_v35 }
 0x106   :  { %v249_v40 = vpop.f32.mrb[2].mxu1 }
 0x107   :  { %262 = vst [vmem:[%s612_s3] sm:$0xff] %v253_v39  ;;  %v250_v41 = vadd.f32 %v307_v34, %v249_v40  ;;  %v251_v42 = vpop.f32.mrb[3].mxu1 }
 0x109   :  { %v254_v44 = vadd.f32 %v250_v41, %v28_v43 }
 0x10b   :  { %263 = vst [vmem:[%s612_s3 + $0x8] sm:$0xff] %v254_v44 }

</bundles_post_ra>
